<compile_context>
chip_gen: v5e
topology: v5e:2x2
jax: 0.10.0
libtpu: 0.0.40
codegen_flags: <defaults>
</compile_context>

<pallas_src>
import functools

import jax
import jax.numpy as jnp
from jax import lax
from jax.experimental import pallas as pl
from jax.experimental.pallas import tpu as pltpu


def _self_attention_kernel(x_ref, mem_ref, bias_ref, w_ref, scale_ref, o_ref,
                           m_sc, l_sc, acc_sc, qb_sc, idot_sc, *, d):
    # x_ref:     (1, TQ, D)    query tile (resident across the kv axis)
    # mem_ref:   (1, TK, D)    memory tile for this kv step
    # bias_ref:  (1, 1, TK)    additive mask bias (already -1e30 * (1 - mask))
    # w_ref:     (1, D)        input_linear weight
    # scale_ref: (1, D)        dot_scale
    # o_ref:     (1, TQ, 2*D)  fused [input, output_one] tile (written last step)
    # m_sc/l_sc: (TQ, 1)  f32  running max / running sum (online softmax)
    # acc_sc:    (TQ, D)  f32  running attention-weighted sum
    # qb_sc:     (TQ, D)  bf16 dot_scale * query, cast once per q-tile
    # idot_sc:   (TQ, 1)  f32  input_linear(query), computed once per q-tile
    kv = pl.program_id(2)

    @pl.when(kv == 0)
    def _init():
        m_sc[...] = jnp.full(m_sc.shape, -jnp.inf, dtype=m_sc.dtype)
        l_sc[...] = jnp.zeros(l_sc.shape, dtype=l_sc.dtype)
        acc_sc[...] = jnp.zeros(acc_sc.shape, dtype=acc_sc.dtype)
        x = x_ref[0]                                               # (TQ, D) f32
        # Per-query linear term (constant over keys): VPU mul + XLU reduce,
        # hoisted out of the kv loop.
        idot_sc[...] = jnp.sum(x * w_ref[...], axis=-1, keepdims=True)
        # dot_scale folded into the query once per q-tile; bf16 MXU operand.
        qb_sc[...] = (x * scale_ref[...]).astype(qb_sc.dtype)

    mem = mem_ref[0]                                               # (TK, D) f32
    kv_op = mem.astype(jnp.bfloat16)                               # shared K / V

    # Scores: contract the last dims of both operands -> no explicit transpose.
    cross = lax.dot_general(qb_sc[...], kv_op,
                            dimension_numbers=(((1,), (1,)), ((), ())),
                            preferred_element_type=jnp.float32)    # (TQ, TK) f32

    # Mask bias + linear term in f32 (must NOT be done in bf16).
    s = cross + idot_sc[...] + bias_ref[0]                         # (TQ, TK)

    # Online softmax update (flash-style).
    m_prev = m_sc[...]
    m_new = jnp.maximum(m_prev, jnp.max(s, axis=-1, keepdims=True))
    alpha = jnp.exp(m_prev - m_new)                                # rescale factor
    p = jnp.exp(s - m_new)                                         # (TQ, TK) f32
    l_sc[...] = alpha * l_sc[...] + jnp.sum(p, axis=-1, keepdims=True)
    acc_sc[...] = alpha * acc_sc[...] + jnp.dot(
        p.astype(jnp.bfloat16), kv_op, preferred_element_type=jnp.float32)
    m_sc[...] = m_new

    @pl.when(kv == pl.num_programs(2) - 1)
    def _finalize():
        inv_l = pl.reciprocal(l_sc[...], approx=True)              # EUP slot
        # Fused concat: write a lane-dense (TQ, 2*D) output block.
        o_ref[0, :, :d] = x_ref[0].astype(o_ref.dtype)
        o_ref[0, :, d:] = (acc_sc[...] * inv_l).astype(o_ref.dtype)


def _choose_tile(n, target, quantum):
    """Largest tile <= target that divides n and is a multiple of `quantum`;
    otherwise fall back to the full extent (full-dim blocks are always legal)."""
    if n <= target:
        return n
    t = (target // quantum) * quantum
    while t >= quantum:
        if n % t == 0:
            return t
        t -= quantum
    return n


def self_attention(inp, memory, mask, linear_w, dot_scale, *, tq=256, tk=512):
    """Pallas implementation of SelfAttention.forward.

    inp:      (B, Lq, D) float32
    memory:   (B, Lm, D) float32
    mask:     (B, Lm)    float/bool (1 keep / 0 masked)
    linear_w: (1, D)     float32  (nn.Linear(D, 1, bias=False).weight)
    dot_scale:(D,)       float32
    returns:  (B, Lq, 2*D) float32  ==  cat([inp, softmax(att) @ memory], -1)
    """
    B, Lq, D = inp.shape
    _, Lm, _ = memory.shape

    # TQ: second-to-last dim of its blocks -> multiple of 8 (or full).
    # TK: last dim of the mask-bias block  -> multiple of 128 (or full).
    tq = _choose_tile(Lq, tq, 8)
    tk = _choose_tile(Lm, tk, 128)
    grid = (B, Lq // tq, Lm // tk)

    # Hoist the mask math out of the kernel: additive bias, reused by every
    # (batch, q-tile, kv-tile) step.
    mask_bias = ((mask.astype(jnp.float32) - 1.0) * 1e30).reshape(B, 1, Lm)
    w2 = linear_w.reshape(1, D).astype(jnp.float32)
    scale2 = dot_scale.reshape(1, D).astype(jnp.float32)

    # TODO(synk): for very small D (<128) the two output half-stores become
    # masked vst; padding D to 128 would make them fully lane-dense.

    kernel = functools.partial(_self_attention_kernel, d=D)

    out = pl.pallas_call(
        kernel,
        out_shape=jax.ShapeDtypeStruct((B, Lq, 2 * D), inp.dtype),
        grid_spec=pltpu.PrefetchScalarGridSpec(
            num_scalar_prefetch=0,
            grid=grid,
            in_specs=[
                pl.BlockSpec((1, tq, D), lambda b, q, k: (b, q, 0)),   # input
                pl.BlockSpec((1, tk, D), lambda b, q, k: (b, k, 0)),   # memory
                pl.BlockSpec((1, 1, tk), lambda b, q, k: (b, 0, k)),   # mask bias
                pl.BlockSpec((1, D), lambda b, q, k: (0, 0)),          # W
                pl.BlockSpec((1, D), lambda b, q, k: (0, 0)),          # dot_scale
            ],
            out_specs=pl.BlockSpec((1, tq, 2 * D), lambda b, q, k: (b, q, 0)),
            scratch_shapes=[
                pltpu.VMEM((tq, 1), jnp.float32),    # running max
                pltpu.VMEM((tq, 1), jnp.float32),    # running sum
                pltpu.VMEM((tq, D), jnp.float32),    # accumulator
                pltpu.VMEM((tq, D), jnp.bfloat16),   # scaled query (bf16)
                pltpu.VMEM((tq, 1), jnp.float32),    # input_dot
            ],
        ),
        compiler_params=pltpu.CompilerParams(
            dimension_semantics=("parallel", "parallel", "arbitrary"),
            # Raise the scoped-VMEM limit while staying under v7x's 64 MiB
            # physical VMEM (tiles here use well under 2 MiB anyway).
            vmem_limit_bytes=48 * 1024 * 1024,
        ),
    )(inp, memory, mask_bias, w2, scale2)

    return out


def _reference(inp, memory, mask, linear_w, dot_scale):
    """Pure-JAX f32 reference mirroring the PyTorch forward exactly."""
    input_dot = inp @ linear_w.T                                   # (B, Lq, 1)
    cross_dot = jnp.einsum('bqd,bkd->bqk', inp * dot_scale, memory)
    att = input_dot + cross_dot
    att = att - 1e30 * (1.0 - mask[:, None, :])
    weight_one = jax.nn.softmax(att, axis=-1)
    output_one = jnp.einsum('bqk,bkd->bqd', weight_one, memory)
    return jnp.concatenate([inp, output_one], axis=-1)


if __name__ == "__main__":
    # Small, deterministic example consistent with the module's forward.
    B, Lq, Lm, D = 2, 256, 256, 128
    key = jax.random.PRNGKey(0)
    k1, k2, k3, k4 = jax.random.split(key, 4)

    inp = jax.random.normal(k1, (B, Lq, D), dtype=jnp.float32)
    memory = jax.random.normal(k2, (B, Lm, D), dtype=jnp.float32)
    # Binary mask over memory positions (last 32 of each row masked out).
    mask = jnp.ones((B, Lm), dtype=jnp.float32).at[:, -32:].set(0.0)

    # Deterministic parameter init (shapes from __init__):
    #   input_linear.weight: (1, D);  dot_scale: (D,) ~ U(1/sqrt(D), 1)
    bound = 1.0 / (D ** 0.5)
    linear_w = jax.random.uniform(k3, (1, D), minval=-bound, maxval=bound,
                                  dtype=jnp.float32)
    dot_scale = jax.random.uniform(k4, (D,), minval=bound, maxval=1.0,
                                   dtype=jnp.float32)

    # tq/tk chosen so the demo exercises both Lq tiling and the online-softmax
    # reduction over multiple Lm tiles: grid = (2, 2, 2).
    out = self_attention(inp, memory, mask, linear_w, dot_scale, tq=128, tk=128)
    out = jax.block_until_ready(out)

    ref = _reference(inp, memory, mask, linear_w, dot_scale)
    assert out.shape == (B, Lq, 2 * D)
    # Tolerance accounts for bf16 MXU operands (f32 accumulation) and the
    # approximate reciprocal in the softmax epilogue.
    assert jnp.allclose(out, ref, atol=5e-2, rtol=5e-2), "mismatch vs reference"

    print("KERNEL_OK")
</pallas_src>

<mosaic_0001>
module attributes {stable_mosaic.version = 11 : i64} {
  func.func @_self_attention_kernel(%arg0: i32, %arg1: i32, %arg2: i32, %arg3: memref<1x128x128xf32, #tpu.memory_space<vmem>>, %arg4: memref<1x128x128xf32, #tpu.memory_space<vmem>>, %arg5: memref<1x1x128xf32, #tpu.memory_space<vmem>>, %arg6: memref<1x128xf32, #tpu.memory_space<vmem>>, %arg7: memref<1x128xf32, #tpu.memory_space<vmem>>, %arg8: memref<1x128x256xf32, #tpu.memory_space<vmem>>, %arg9: memref<128x1xf32, #tpu.memory_space<vmem>>, %arg10: memref<128x1xf32, #tpu.memory_space<vmem>>, %arg11: memref<128x128xf32, #tpu.memory_space<vmem>>, %arg12: memref<128x128xbf16, #tpu.memory_space<vmem>>, %arg13: memref<128x1xf32, #tpu.memory_space<vmem>>) attributes {dimension_semantics = [#tpu.dimension_semantics<parallel>, #tpu.dimension_semantics<parallel>, #tpu.dimension_semantics<arbitrary>], iteration_bounds = array<i64: 2, 2, 2>, scalar_prefetch = 0 : i64, scratch_operands = 5 : i64, tpu.core_type = #tpu.core_type<tc>, window_params = [{transform_indices = @transform_0, window_bounds = array<i64: 1, 128, 128>}, {transform_indices = @transform_1, window_bounds = array<i64: 1, 128, 128>}, {transform_indices = @transform_2, window_bounds = array<i64: 1, 1, 128>}, {pipeline_mode = #tpu.pipeline_mode<synchronous>, transform_indices = @transform_3, window_bounds = array<i64: 1, 128>}, {pipeline_mode = #tpu.pipeline_mode<synchronous>, transform_indices = @transform_4, window_bounds = array<i64: 1, 128>}, {transform_indices = @transform_5, window_bounds = array<i64: 1, 128, 256>}]} {
    %c0_i32 = arith.constant 0 : i32
    %0 = arith.cmpi eq, %arg2, %c0_i32 : i32
    %1 = arith.extui %0 : i1 to i32
    %c0_i32_0 = arith.constant 0 : i32
    %2 = arith.cmpi ne, %1, %c0_i32_0 : i32
    scf.if %2 {
      %cst_26 = arith.constant 0xFF800000 : f32
      %41 = vector.broadcast %cst_26 : f32 to vector<128x1xf32>
      %c0_27 = arith.constant 0 : index
      %c0_28 = arith.constant 0 : index
      %42 = vector.load %arg9[%c0_27, %c0_28] : memref<128x1xf32, #tpu.memory_space<vmem>>, vector<128x1xf32>
      tpu.vector_store %arg9[%c0_27, %c0_28], %41 {strides = array<i32>} : memref<128x1xf32, #tpu.memory_space<vmem>>, vector<128x1xf32>,
      %cst_29 = arith.constant 0.000000e+00 : f32
      %43 = vector.broadcast %cst_29 : f32 to vector<128x1xf32>
      %c0_30 = arith.constant 0 : index
      %c0_31 = arith.constant 0 : index
      %44 = vector.load %arg10[%c0_30, %c0_31] : memref<128x1xf32, #tpu.memory_space<vmem>>, vector<128x1xf32>
      tpu.vector_store %arg10[%c0_30, %c0_31], %43 {strides = array<i32>} : memref<128x1xf32, #tpu.memory_space<vmem>>, vector<128x1xf32>,
      %cst_32 = arith.constant 0.000000e+00 : f32
      %45 = vector.broadcast %cst_32 : f32 to vector<128x128xf32>
      %c0_33 = arith.constant 0 : index
      %c0_34 = arith.constant 0 : index
      %46 = vector.load %arg11[%c0_33, %c0_34] : memref<128x128xf32, #tpu.memory_space<vmem>>, vector<128x128xf32>
      tpu.vector_store %arg11[%c0_33, %c0_34], %45 {strides = array<i32>} : memref<128x128xf32, #tpu.memory_space<vmem>>, vector<128x128xf32>,
      %c0_35 = arith.constant 0 : index
      %c0_36 = arith.constant 0 : index
      %c0_37 = arith.constant 0 : index
      %47 = vector.load %arg3[%c0_35, %c0_36, %c0_37] : memref<1x128x128xf32, #tpu.memory_space<vmem>>, vector<1x128x128xf32>
      %48 = vector.shape_cast %47 : vector<1x128x128xf32> to vector<128x128xf32>
      %c0_38 = arith.constant 0 : index
      %c0_39 = arith.constant 0 : index
      %49 = vector.load %arg6[%c0_38, %c0_39] : memref<1x128xf32, #tpu.memory_space<vmem>>, vector<1x128xf32>
      %50 = vector.broadcast %49 : vector<1x128xf32> to vector<128x128xf32>
      %51 = arith.mulf %48, %50 : vector<128x128xf32>
      %cst_40 = arith.constant dense<0.000000e+00> : vector<128xf32>
      %52 = vector.multi_reduction <add>, %51, %cst_40 [1] : vector<128x128xf32> to vector<128xf32>
      %53 = vector.shape_cast %52 : vector<128xf32> to vector<128x1xf32>
      %c0_41 = arith.constant 0 : index
      %c0_42 = arith.constant 0 : index
      %54 = vector.load %arg13[%c0_41, %c0_42] : memref<128x1xf32, #tpu.memory_space<vmem>>, vector<128x1xf32>
      tpu.vector_store %arg13[%c0_41, %c0_42], %53 {strides = array<i32>} : memref<128x1xf32, #tpu.memory_space<vmem>>, vector<128x1xf32>,
      %c0_43 = arith.constant 0 : index
      %c0_44 = arith.constant 0 : index
      %55 = vector.load %arg7[%c0_43, %c0_44] : memref<1x128xf32, #tpu.memory_space<vmem>>, vector<1x128xf32>
      %56 = vector.broadcast %55 : vector<1x128xf32> to vector<128x128xf32>
      %57 = arith.mulf %48, %56 : vector<128x128xf32>
      %58 = arith.truncf %57 : vector<128x128xf32> to vector<128x128xbf16>
      %c0_45 = arith.constant 0 : index
      %c0_46 = arith.constant 0 : index
      %59 = vector.load %arg12[%c0_45, %c0_46] : memref<128x128xbf16, #tpu.memory_space<vmem>>, vector<128x128xbf16>
      tpu.vector_store %arg12[%c0_45, %c0_46], %58 {strides = array<i32>} : memref<128x128xbf16, #tpu.memory_space<vmem>>, vector<128x128xbf16>,
    } else {
    }
    %c0 = arith.constant 0 : index
    %c0_1 = arith.constant 0 : index
    %c0_2 = arith.constant 0 : index
    %3 = vector.load %arg4[%c0, %c0_1, %c0_2] : memref<1x128x128xf32, #tpu.memory_space<vmem>>, vector<1x128x128xf32>
    %4 = vector.shape_cast %3 : vector<1x128x128xf32> to vector<128x128xf32>
    %5 = arith.truncf %4 : vector<128x128xf32> to vector<128x128xbf16>
    %c0_3 = arith.constant 0 : index
    %c0_4 = arith.constant 0 : index
    %6 = vector.load %arg12[%c0_3, %c0_4] : memref<128x128xbf16, #tpu.memory_space<vmem>>, vector<128x128xbf16>
    %cst = arith.constant dense<0.000000e+00> : vector<128x128xf32>
    %7 = tpu.matmul %6, %5, %cst {dimension_numbers = #tpu.dot_dimension_numbers<[1], [1], [0], [0], [0, 0, 1, 0], [], []>} : vector<128x128xbf16>, vector<128x128xbf16>, vector<128x128xf32> -> vector<128x128xf32>
    %c0_5 = arith.constant 0 : index
    %c0_6 = arith.constant 0 : index
    %8 = vector.load %arg13[%c0_5, %c0_6] : memref<128x1xf32, #tpu.memory_space<vmem>>, vector<128x1xf32>
    %9 = vector.broadcast %8 : vector<128x1xf32> to vector<128x128xf32>
    %10 = arith.addf %7, %9 : vector<128x128xf32>
    %c0_7 = arith.constant 0 : index
    %c0_8 = arith.constant 0 : index
    %c0_9 = arith.constant 0 : index
    %11 = vector.load %arg5[%c0_7, %c0_8, %c0_9] : memref<1x1x128xf32, #tpu.memory_space<vmem>>, vector<1x1x128xf32>
    %12 = vector.shape_cast %11 : vector<1x1x128xf32> to vector<1x128xf32>
    %13 = vector.broadcast %12 : vector<1x128xf32> to vector<128x128xf32>
    %14 = arith.addf %10, %13 : vector<128x128xf32>
    %c0_10 = arith.constant 0 : index
    %c0_11 = arith.constant 0 : index
    %15 = vector.load %arg9[%c0_10, %c0_11] : memref<128x1xf32, #tpu.memory_space<vmem>>, vector<128x1xf32>
    %cst_12 = arith.constant dense<0xFF800000> : vector<128xf32>
    %16 = vector.multi_reduction <maximumf>, %14, %cst_12 [1] : vector<128x128xf32> to vector<128xf32>
    %17 = vector.shape_cast %16 : vector<128xf32> to vector<128x1xf32>
    %18 = arith.maximumf %15, %17 : vector<128x1xf32>
    %19 = arith.subf %15, %18 : vector<128x1xf32>
    %20 = math.exp %19 : vector<128x1xf32>
    %21 = vector.broadcast %18 : vector<128x1xf32> to vector<128x128xf32>
    %22 = arith.subf %14, %21 : vector<128x128xf32>
    %23 = math.exp %22 : vector<128x128xf32>
    %c0_13 = arith.constant 0 : index
    %c0_14 = arith.constant 0 : index
    %24 = vector.load %arg10[%c0_13, %c0_14] : memref<128x1xf32, #tpu.memory_space<vmem>>, vector<128x1xf32>
    %25 = arith.mulf %20, %24 : vector<128x1xf32>
    %cst_15 = arith.constant dense<0.000000e+00> : vector<128xf32>
    %26 = vector.multi_reduction <add>, %23, %cst_15 [1] : vector<128x128xf32> to vector<128xf32>
    %27 = vector.shape_cast %26 : vector<128xf32> to vector<128x1xf32>
    %28 = arith.addf %25, %27 : vector<128x1xf32>
    %c0_16 = arith.constant 0 : index
    %c0_17 = arith.constant 0 : index
    %29 = vector.load %arg10[%c0_16, %c0_17] : memref<128x1xf32, #tpu.memory_space<vmem>>, vector<128x1xf32>
    tpu.vector_store %arg10[%c0_16, %c0_17], %28 {strides = array<i32>} : memref<128x1xf32, #tpu.memory_space<vmem>>, vector<128x1xf32>,
    %c0_18 = arith.constant 0 : index
    %c0_19 = arith.constant 0 : index
    %30 = vector.load %arg11[%c0_18, %c0_19] : memref<128x128xf32, #tpu.memory_space<vmem>>, vector<128x128xf32>
    %31 = vector.broadcast %20 : vector<128x1xf32> to vector<128x128xf32>
    %32 = arith.mulf %31, %30 : vector<128x128xf32>
    %33 = arith.truncf %23 : vector<128x128xf32> to vector<128x128xbf16>
    %cst_20 = arith.constant dense<0.000000e+00> : vector<128x128xf32>
    %34 = tpu.matmul %33, %5, %cst_20 {dimension_numbers = #tpu.dot_dimension_numbers<[1], [0], [0], [1], [0, 0, 1, 1], [], []>} : vector<128x128xbf16>, vector<128x128xbf16>, vector<128x128xf32> -> vector<128x128xf32>
    %35 = arith.addf %32, %34 : vector<128x128xf32>
    %c0_21 = arith.constant 0 : index
    %c0_22 = arith.constant 0 : index
    %36 = vector.load %arg11[%c0_21, %c0_22] : memref<128x128xf32, #tpu.memory_space<vmem>>, vector<128x128xf32>
    tpu.vector_store %arg11[%c0_21, %c0_22], %35 {strides = array<i32>} : memref<128x128xf32, #tpu.memory_space<vmem>>, vector<128x128xf32>,
    %c0_23 = arith.constant 0 : index
    %c0_24 = arith.constant 0 : index
    %37 = vector.load %arg9[%c0_23, %c0_24] : memref<128x1xf32, #tpu.memory_space<vmem>>, vector<128x1xf32>
    tpu.vector_store %arg9[%c0_23, %c0_24], %18 {strides = array<i32>} : memref<128x1xf32, #tpu.memory_space<vmem>>, vector<128x1xf32>,
    %c1_i32 = arith.constant 1 : i32
    %38 = arith.cmpi eq, %arg2, %c1_i32 : i32
    %39 = arith.extui %38 : i1 to i32
    %c0_i32_25 = arith.constant 0 : i32
    %40 = arith.cmpi ne, %39, %c0_i32_25 : i32
    scf.if %40 {
      %c0_26 = arith.constant 0 : index
      %c0_27 = arith.constant 0 : index
      %41 = vector.load %arg10[%c0_26, %c0_27] : memref<128x1xf32, #tpu.memory_space<vmem>>, vector<128x1xf32>
      %42 = tpu.reciprocal %41 {approx = true} : vector<128x1xf32> -> vector<128x1xf32>
      %c0_28 = arith.constant 0 : index
      %c0_29 = arith.constant 0 : index
      %c0_30 = arith.constant 0 : index
      %43 = vector.load %arg3[%c0_28, %c0_29, %c0_30] : memref<1x128x128xf32, #tpu.memory_space<vmem>>, vector<1x128x128xf32>
      %44 = vector.shape_cast %43 : vector<1x128x128xf32> to vector<128x128xf32>
      %c0_31 = arith.constant 0 : index
      %c0_32 = arith.constant 0 : index
      %c0_33 = arith.constant 0 : index
      %45 = vector.load %arg8[%c0_31, %c0_32, %c0_33] : memref<1x128x256xf32, #tpu.memory_space<vmem>>, vector<1x128x128xf32>
      %46 = vector.shape_cast %45 : vector<1x128x128xf32> to vector<128x128xf32>
      %47 = vector.shape_cast %44 : vector<128x128xf32> to vector<1x128x128xf32>
      tpu.vector_store %arg8[%c0_31, %c0_32, %c0_33], %47 {strides = array<i32>} : memref<1x128x256xf32, #tpu.memory_space<vmem>>, vector<1x128x128xf32>,
      %c0_34 = arith.constant 0 : index
      %c0_35 = arith.constant 0 : index
      %48 = vector.load %arg11[%c0_34, %c0_35] : memref<128x128xf32, #tpu.memory_space<vmem>>, vector<128x128xf32>
      %49 = vector.broadcast %42 : vector<128x1xf32> to vector<128x128xf32>
      %50 = arith.mulf %48, %49 : vector<128x128xf32>
      %c0_36 = arith.constant 0 : index
      %c0_37 = arith.constant 0 : index
      %c128 = arith.constant 128 : index
      %51 = vector.load %arg8[%c0_36, %c0_37, %c128] : memref<1x128x256xf32, #tpu.memory_space<vmem>>, vector<1x128x128xf32>
      %52 = vector.shape_cast %51 : vector<1x128x128xf32> to vector<128x128xf32>
      %53 = vector.shape_cast %50 : vector<128x128xf32> to vector<1x128x128xf32>
      tpu.vector_store %arg8[%c0_36, %c0_37, %c128], %53 {strides = array<i32>} : memref<1x128x256xf32, #tpu.memory_space<vmem>>, vector<1x128x128xf32>,
    } else {
    }
    return
  }
  func.func @transform_0(%arg0: i32, %arg1: i32, %arg2: i32) -> (i32, i32, i32) {
    %c0_i32 = arith.constant 0 : i32
    %c0_i32_0 = arith.constant 0 : i32
    return %arg0, %arg1, %c0_i32 : i32, i32, i32
  }
  func.func @transform_1(%arg0: i32, %arg1: i32, %arg2: i32) -> (i32, i32, i32) {
    %c0_i32 = arith.constant 0 : i32
    %c0_i32_0 = arith.constant 0 : i32
    return %arg0, %arg2, %c0_i32 : i32, i32, i32
  }
  func.func @transform_2(%arg0: i32, %arg1: i32, %arg2: i32) -> (i32, i32, i32) {
    %c0_i32 = arith.constant 0 : i32
    %c0_i32_0 = arith.constant 0 : i32
    return %arg0, %c0_i32, %arg2 : i32, i32, i32
  }
  func.func @transform_3(%arg0: i32, %arg1: i32, %arg2: i32) -> (i32, i32) {
    %c0_i32 = arith.constant 0 : i32
    %c0_i32_0 = arith.constant 0 : i32
    %c0_i32_1 = arith.constant 0 : i32
    return %c0_i32, %c0_i32_0 : i32, i32
  }
  func.func @transform_4(%arg0: i32, %arg1: i32, %arg2: i32) -> (i32, i32) {
    %c0_i32 = arith.constant 0 : i32
    %c0_i32_0 = arith.constant 0 : i32
    %c0_i32_1 = arith.constant 0 : i32
    return %c0_i32, %c0_i32_0 : i32, i32
  }
  func.func @transform_5(%arg0: i32, %arg1: i32, %arg2: i32) -> (i32, i32, i32) {
    %c0_i32 = arith.constant 0 : i32
    %c0_i32_0 = arith.constant 0 : i32
    return %arg0, %arg1, %c0_i32 : i32, i32, i32
  }
}

</mosaic_0001>

<bundles_post_ra>
// kernel: tpu_custom_call.1
= control target key start
LH: loop header
LB: loop body
LE: loop exit
PB: predicated region body
PF: predicated region fallthrough
CT: control target
= control target key end

     0   :  { %s3163_s0 = inlined_call_operand.hbm [shape: f32[2,256,128], index: 0, kind: input, shape index: {}]   ;;  %s3164_s1 = inlined_call_operand.hbm [shape: f32[2,256,128], index: 1, kind: input, shape index: {}]   ;;  %s3165_s2 = inlined_call_operand.hbm [shape: f32[2,1,256], index: 2, kind: input, shape index: {}]   ;;  %s3166_s3 = inlined_call_operand.vmem [shape: f32[1,128], index: 3, kind: input, shape index: {}]   ;;  %s3167_s4 = inlined_call_operand.vmem [shape: f32[1,128], index: 4, kind: input, shape index: {}]   ;;  %s3168_s5 = inlined_call_operand.hbm [shape: f32[2,256,256], index: 5, kind: output, shape index: {}]  }
   0x1   :  { %3188 = sst [smem:[#allocation31_spill]] %s3164_s1 }
   0x2   :  { %3189 = sst [smem:[#allocation32_spill]] %s3166_s3 }
   0x3   :  { %3190 = sst [smem:[#allocation33_spill]] %s3167_s4 }
   0x4   :  { %3191 = sst [smem:[#allocation34_spill]] %s3168_s5 }
   0x5   :  { %10 = vsyncpa [#allocation8], 0 }
   0x6   :  { %12 = vsyncpa [#allocation8 + $0x1], 0 }
   0x7   :  { %13 = vsyncpa [#allocation11], 0 }
   0x8   :  { %15 = vsyncpa [#allocation11 + $0x1], 0 }
   0x9   :  { %16 = vsyncpa [#allocation9], 0 }
   0xa   :  { %18 = vsyncpa [#allocation9 + $0x1], 0  ;;  %s2349_s18 = smov 0   ;;  %s2351_s19 = smov 0  }
   0xb   :  { %s2353_s20 = smov 0   ;;  %s2355_s21 = smov 0  }
   0xc   :  { %s2357_s22 = smov 0   ;;  %s2359_s23 = smov 0  }
   0xd   :  { %s2361_s24 = smov 0   ;;  %s2363_s25 = smov 0  }
   0xe   :  { %s2365_s26 = smov 0   ;;  %s2367_s27 = smov 0  }
   0xf   :  { %s2369_s28 = smov 0   ;;  %s2371_s29 = smov 0  }
  0x10   :  { %s2373_s30 = smov 0  }
  0x11 LB: > { %3192 = sst [smem:[#allocation17_spill]] %s2265_s19  ;;  %s2413_s6 = sadd.s32 4294967295, %s2309_s30   ;;  %s2309_s30 = sphi %s2373_s30, %s24_s30   ;;  %s2305_s29 = sphi %s2371_s29, %s3257_s29   ;;  %s2301_s28 = sphi %s2369_s28, %s3256_s28   ;;  %s2297_s27 = sphi %s2367_s27, %s3255_s27   ;;  %s2293_s26 = sphi %s2365_s26, %s3254_s26   ;;  %s2289_s25 = sphi %s2363_s25, %s3253_s25   ;;  %s2285_s24 = sphi %s2361_s24, %s3252_s24   ;;  %s2281_s23 = sphi %s2359_s23, %s3251_s23   ;;  %s2277_s22 = sphi %s2357_s22, %s3250_s22   ;;  %s2273_s21 = sphi %s2355_s21, %s3249_s21   ;;  %s2269_s20 = sphi %s2353_s20, %s3248_s20   ;;  %s2265_s19 = sphi %s2351_s19, %s3247_s19   ;;  %s2261_s18 = sphi %s2349_s18, %s3239_s18  }
  0x12   : > { %3193 = sst [smem:[#allocation18_spill]] %s2273_s21  ;;  %s36_s7 = sadd.s32 1, %s2297_s27 }
  0x13   : > { %3194 = sst [smem:[#allocation19_spill]] %s2277_s22  ;;  %p2416_p0 = scmp.ge.s32.totalorder %s36_s7, 2 }
  0x14   : > { %3195 = sst [smem:[#allocation20_spill]] %s2285_s24  ;;  %p60_p1 = scmp.eq.s32.totalorder %s2309_s30, 0 }
  0x15   : > { %3196 = sst [smem:[#allocation21_spill]] %s2289_s25  ;;  %p66_p2 = scmp.eq.s32.totalorder %s2413_s6, 0 }
  0x16   : > { %3197 = sst [smem:[#allocation22_spill]] %s2293_s26  ;;  %s3259_s7 = smov (%p2416_p0, %s36_s7), 0 }
  0x17   : > { %3198 = sst [smem:[#allocation23_spill]] %s2301_s28  ;;  %p87_p3 = scmp.ne.s32.totalorder %s2269_s20, %s2265_s19 }
  0x18   : > { %3199 = sst [smem:[#allocation24_spill]] %s2413_s6  ;;  %p93_p4 = scmp.ne.s32.totalorder %s2265_s19, %s2261_s18 }
  0x19   : > { %p2435_p5 = por %p87_p3, %p60_p1  ;;  %p1858_p7 = scmp.lt.s32.totalorder %s2309_s30, 8 }
  0x1a   : > { %p2441_p6 = por %p93_p4, %p66_p2  ;;  %s3173_s14 = sshll.u32 %s2305_s29, 5 }
  0x1b   : > { %s245_s15 = sand.u32 1, %s2309_s30   ;;  %s3170_s16 = sand.u32 1, %s2269_s20  }
  0x1c   : > { %s3202_s13 = scalar_select %p2441_p6, 1, 0 }
  0x1d   : > { %s1714_s17 = sshll.u32 %s3170_s16, 7  ;;  %s1715_s18 = sshll.u32 %s2297_s27, 4 }
  0x1e   : > { %3203 = sst [smem:[#allocation25_spill]] %s3202_s13  ;;  %s254_s10 = sadd.s32 %s1715_s18, %s3173_s14 }
  0x1f   : > { %s1717_s11 = sshll.u32 %s254_s10, 3  ;;  %s249_s9 = scalar_lea.vmem [#allocation10], %s1714_s17 }
  0x20   : > { %s259_s5 = sshll.u32 %s249_s9, 4  ;;  %s3204_s1 = sld [smem:[#allocation31_spill]]  ;;  %s260_s5 = int_to_ptr.vmem [resolvable:$true] %s259_s5 }
  0x21   : > { %p2461_p8 = pnand %p1858_p7, %p2435_p5  ;;  %p1719_p9 = scmp.ge.s32.totalorder %s2309_s30, 1 }
  0x22   : > { %p286_p10 = scmp.lt.s32.totalorder %s2309_s30, 9  ;;  %s2467_s25 = scalar_lea.sflag [#allocation11], %s245_s15 }
  0x23   : > { %s3172_s26 = smov 8   ;;  %s39_s12 = sadd.s32 1, %s2301_s28 }
  0x24   : > { %p2475_p11 = pnand %p1719_p9, %p286_p10  ;;  %s52_s15 = sadd.s32 1, %s2281_s23 }
  0x25   : > { %s3261_s12 = smov (!%p2416_p0, %s39_s12), %s2301_s28  ;;  %p59_p12 = scmp.ne.s32.totalorder %s2281_s23, %s2277_s22 }
  0x26   : > { %s256_s4 = scalar_lea.hbm %s3204_s1, %s1717_s11  ;;  %s1707_s11 = sadd.s32 4294967294, %s2309_s30  }
  0x27   : > { %s257_s16 = sshll.u32 %s256_s4, 4  ;;  %s3171_s4 = smov 128   ;;  %s258_s16 = int_to_ptr.hbm [resolvable:$true] %s257_s16 }
  0x28   : > { %1850 = dma.hbm_to_vmem [thread:$0]  (!%p2461_p8), %s258_s16, 2048, %s260_s5, %s2467_s25, %s3171_s4, %s3171_s4, %s3172_s26  }
  0x29   : > { %p65_p13 = scmp.ne.s32.totalorder %s2277_s22, %s2273_s21  ;;  %p41_p3 = scmp.ge.s32.totalorder %s3261_s12, 2 }
  0x2a   : > { %p189_p4 = scmp.eq.s32.totalorder %s2413_s6, 7  ;;  %p2492_p5 = por %p60_p1, %p59_p12 }
  0x2b   : > { %p2501_p9 = por %p66_p2, %p65_p13  ;;  %s3263_s12 = smov (%p41_p3, %s3261_s12), 0 }
  0x2c   : > { %3210 = sst [smem:[#allocation27_spill]] %s3263_s12  ;;  %s3211_s8 = sadd.s32 1, %s2305_s29 }
  0x2d   : > { %s3208_s16 = scalar_select %p2501_p9, 1, 0 }
  0x2e   : > { %s3265_s8 = smov (!%p41_p3, %s3211_s8), %s2305_s29  ;;  %s48_s17 = ssub.s32 %s2301_s28, %s3263_s12 }
  0x2f   : > { %3209 = sst [smem:[#allocation26_spill]] %s3208_s16  ;;  %p2512_p0 = por %p189_p4, %p59_p12 }
  0x30   : > { %p45_p1 = scmp.ge.s32.totalorder %s3265_s8, 2  ;;  %p195_p10 = scmp.eq.s32.totalorder %s1707_s11, 7 }
  0x31   : > { %s3212_s18 = scalar_select %p2512_p0, 1, 0 }
  0x32   : > { %s221_s4 = sand.u32 1, %s2281_s23   ;;  %s1711_s26 = sshll.u32 %s2301_s28, 4 }
  0x33   : > { %3213 = sst [smem:[#allocation28_spill]] %s3212_s18  ;;  %s3267_s8 = smov (%p45_p1, %s3265_s8), 0 }
  0x34   : > { %3214 = sst [smem:[#allocation29_spill]] %s3267_s8  ;;  %p2523_p2 = por %p195_p10, %p65_p13 }
  0x35   : > { %s47_s1 = ssub.s32 %s2305_s29, %s3267_s8  ;;  %s1710_s12 = sshll.u32 %s221_s4, 7 }
  0x36   : > { %s3215_s14 = scalar_select %p2523_p2, 1, 0 }
  0x37   : > { %s49_s3 = sor.u32 %s48_s17, %s47_s1  ;;  %s3217_s24 = ssub.s32 %s2297_s27, %s3259_s7 }
  0x38   : > { %3216 = sst [smem:[#allocation30_spill]] %s3215_s14  ;;  %s77_s18 = sor.u32 %s3217_s24, %s47_s1 }
  0x39   : > { %p50_p12 = scmp.eq.s32.totalorder %s49_s3, 0  ;;  %p78_p3 = scmp.eq.s32.totalorder %s77_s18, 0 }
  0x3a   : > { %s3218_s11 = sshll.u32 %s2305_s29, 5  ;;  %s3219_s13 = sadd.s32 1, %s2269_s20 }
  0x3b   : > { %s230_s28 = sadd.s32 %s3218_s11, %s1711_s26  ;;  %s225_s6 = scalar_lea.vmem [#allocation7], %s1710_s12 }
  0x3c   : > { %s2535_s21 = scalar_select %p50_p12, %s2281_s23, %s52_s15  }
  0x3d   : > { %s2540_s19 = scalar_select %p78_p3, %s2269_s20, %s3219_s13  }
  0x3e   : > { %s1713_s14 = sshll.u32 %s230_s28, 3  ;;  %s235_s16 = sshll.u32 %s225_s6, 4  ;;  %s236_s16 = int_to_ptr.vmem [resolvable:$true] %s235_s16 }
  0x3f   : > { %s232_s1 = scalar_lea.hbm %s3163_s0, %s1713_s14  ;;  %p1845_p13 = pnand %p1858_p7, %p2492_p5 }
  0x40   : > { %s233_s3 = sshll.u32 %s232_s1, 4  ;;  %s1718_s24 = sshll.u32 %s2305_s29, 1  ;;  %s234_s3 = int_to_ptr.hbm [resolvable:$true] %s233_s3 }
  0x41   : > { %s222_s26 = scalar_lea.sflag [#allocation8], %s221_s4  ;;  %s3220_s15 = smov 8  }
  0x42   : > { %s3221_s13 = smov 128   ;;  %s276_s28 = sadd.s32 %s2297_s27, %s1718_s24 }
  0x43   : > { %1847 = dma.hbm_to_vmem [thread:$0]  (!%p1845_p13), %s234_s3, 2048, %s236_s16, %s222_s26, %s3221_s13, %s3221_s13, %s3220_s15  }
  0x44   : > { %s3222_s6 = sand.u32 1, %s2269_s20   ;;  %s277_s14 = scalar_lea.hbm %s3165_s2, %s276_s28 }
  0x45   : > { %s272_s12 = scalar_lea.vmem [#allocation12], %s3222_s6  ;;  %s279_s18 = sshll.u32 %s277_s14, 4  ;;  %s280_s18 = int_to_ptr.hbm [resolvable:$true] %s279_s18 }
  0x46   : > { %s281_s17 = sshll.u32 %s272_s12, 4  ;;  %290 = sbr.rel (%p2475_p11) target bundleno = 1136 (0x470), region = 40  ;;  %s282_s17 = int_to_ptr.vmem [resolvable:$true] %s281_s17 }
  0x47   : > { %1853 = dma.hbm_to_vmem [thread:$0]  (!%p2461_p8), %s280_s18, 16, %s282_s17, %s2467_s25  }
  0x48   : > { %s3223_s4 = sld [smem:[#allocation19_spill]] (!%p2475_p11) }
  0x4e   : > { %s2565_s11 = sand.u32 1, %s3223_s4  }
  0x4f   : > { %s1720_s16 = sshll.u32 %s2565_s11, 7  ;;  %s293_s1 = scalar_lea.sflag [#allocation8], %s2565_s11 }
  0x50   : > { %s2569_s3 = scalar_lea.vmem [#allocation7], %s1720_s16 }
  0x51   : > { %2248 = dma.done.wait (%p2501_p9), %s293_s1, 2048  }
  0x52   : > { %2250 = vsyncadd (%p2501_p9), %s293_s1, 4294965248  ;;  %s3225_s10 = sld [smem:[#allocation24_spill]] }
  0x53   : > { %s3226_s25 = sld [smem:[#allocation17_spill]] }
  0x58   : > { %s302_s9 = sand.u32 1, %s3225_s10  }
  0x59   : > { %s304_s26 = sand.u32 1, %s3226_s25   ;;  %s303_s13 = scalar_lea.sflag [#allocation11], %s302_s9 }
  0x5a   : > { %s1721_s15 = sshll.u32 %s304_s26, 7 }
  0x5b   : > { %s2577_s28 = scalar_lea.vmem [#allocation10], %s1721_s15 }
  0x5c   : > { %2252 = dma.done.wait (%p2441_p6), %s303_s13, 2064  }
  0x5d   : > { %2254 = vsyncadd (%p2441_p6), %s303_s13, 4294965232  ;;  %s1722_s6 = sshll.u32 %s2565_s11, 8  ;;  %s2584_s12 = scalar_lea.vmem [#allocation12], %s304_s26 }
  0x5e   : > { %s2586_s17 = scalar_lea.vmem [#allocation13], %s1722_s6  ;;  %s3228_s22 = sld [smem:[#allocation20_spill]] }
  0x64   : > { %p1723_p7 = scmp.ne.s32.totalorder %s3228_s22, 0 }
  0x65   : > { %s3229_s18 = sld [smem:[#allocation32_spill]] (!%p1723_p7) }
  0x66   : > { %358 = sbr.rel (%p1723_p7) target bundleno = 268 (0x10c), region = 56  ;;  %s3230_s16 = sld [smem:[#allocation33_spill]] (!%p1723_p7) }
  0x6b   : > { %v408_v0 = vld [vmem:[%s2569_s3] sm:$0xff]  ;;  %v410_v6 = vld [vmem:[%s2569_s3 + $0x10] sm:$0xff]  ;;  %v409_v11 = vld [vmem:[%s2569_s3 + $0x8] sm:$0xff]  ;;  %vm359_vm0 = vcmask 7168   ;;  %v2313_v58 = vmov -inf   ;;  %v2314_v59 = vmov 0.0  }
  0x6c   : > { %v2593_v1 = vld [vmem:[%s3229_s18] ss:$0 sm:$0xff]  ;;  %v413_v13 = vld [vmem:[%s2569_s3 + $0x28] sm:$0xff]  ;;  %v411_v14 = vld [vmem:[%s2569_s3 + $0x18] sm:$0xff]  ;;  %360 = vst.msk [vmem:[#allocation2] sm:$0xff] %vm359_vm0, %v2313_v58 }
  0x6d   : > { %v1973_v2 = vld [vmem:[%s3230_s16] ss:$0 sm:$0xff]  ;;  %v428_v4 = vmul.f32 %v2593_v1, %v408_v0  ;;  %v430_v9 = vmul.f32 %v2593_v1, %v410_v6  ;;  %v414_v17 = vld [vmem:[%s2569_s3 + $0x30] sm:$0xff]  ;;  %v415_v22 = vld [vmem:[%s2569_s3 + $0x38] sm:$0xff]  ;;  %v429_v28 = vmul.f32 %v2593_v1, %v409_v11  ;;  %v433_v29 = vmul.f32 %v2593_v1, %v413_v13  ;;  %361 = vst.msk [vmem:[#allocation2 + $0x8] sm:$0xff] %vm359_vm0, %v2313_v58 }
  0x6e   : > { %v412_v3 = vld [vmem:[%s2569_s3 + $0x20] sm:$0xff]  ;;  %v496_v7 = vmul.f32 %v1973_v2, %v408_v0  ;;  %v498_v10 = vmul.f32 %v1973_v2, %v410_v6  ;;  %v497_v12 = vmul.f32 %v1973_v2, %v409_v11  ;;  %v501_v15 = vmul.f32 %v1973_v2, %v413_v13  ;;  %v417_v26 = vld [vmem:[%s2569_s3 + $0x48] sm:$0xff]  ;;  %v419_v27 = vld [vmem:[%s2569_s3 + $0x58] sm:$0xff]  ;;  %362 = vst.msk [vmem:[#allocation2 + $0x10] sm:$0xff] %vm359_vm0, %v2313_v58 }
  0x6f   : > { %v432_v5 = vmul.f32 %v2593_v1, %v412_v3  ;;  %v500_v8 = vmul.f32 %v1973_v2, %v412_v3  ;;  %444 = vadd.xlane.f32.xlu0 %v428_v4  ;;  %448 = vadd.xlane.f32.xlu1 %v430_v9  ;;  %v499_v16 = vmul.f32 %v1973_v2, %v411_v14  ;;  %v416_v18 = vld [vmem:[%s2569_s3 + $0x40] sm:$0xff]  ;;  %v418_v32 = vld [vmem:[%s2569_s3 + $0x50] sm:$0xff]  ;;  %v421_v41 = vld [vmem:[%s2569_s3 + $0x68] sm:$0xff] }
  0x70   : > { %v1776_v19 = vpack.c.bf16 %v497_v12, %v496_v7  ;;  %v502_v20 = vmul.f32 %v1973_v2, %v414_v17  ;;  %v504_v21 = vmul.f32 %v1973_v2, %v416_v18  ;;  %v503_v25 = vmul.f32 %v1973_v2, %v415_v22  ;;  %v420_v36 = vld [vmem:[%s2569_s3 + $0x60] sm:$0xff]  ;;  %v422_v37 = vld [vmem:[%s2569_s3 + $0x70] sm:$0xff]  ;;  %v423_v44 = vld [vmem:[%s2569_s3 + $0x78] sm:$0xff]  ;;  %363 = vst.msk [vmem:[#allocation2 + $0x18] sm:$0xff] %vm359_vm0, %v2313_v58 }
  0x71   : > { %452 = vadd.xlane.f32.xlu2 %v432_v5  ;;  %v1786_v23 = vpack.c.bf16 %v501_v15, %v500_v8  ;;  %v1781_v24 = vpack.c.bf16 %v499_v16, %v498_v10  ;;  %v505_v30 = vmul.f32 %v1973_v2, %v417_v26  ;;  %v507_v31 = vmul.f32 %v1973_v2, %v419_v27 }
  0x72   : > { %1777 = vst [vmem:[#allocation5 + $0x28] sm:$0xff] %v1776_v19   ;;  %v431_v33 = vmul.f32 %v2593_v1, %v411_v14  ;;  %v1791_v34 = vpack.c.bf16 %v503_v25, %v502_v20  ;;  %v506_v35 = vmul.f32 %v1973_v2, %v418_v32  ;;  %v508_v39 = vmul.f32 %v1973_v2, %v420_v36 }
  0x73   : > { %1814 = vst [vmem:[#allocation5 + $0x10] sm:$0xff] %v1786_v23   ;;  %v1796_v38 = vpack.c.bf16 %v505_v30, %v504_v21  ;;  %v510_v40 = vmul.f32 %v1973_v2, %v422_v37  ;;  %v509_v43 = vmul.f32 %v1973_v2, %v421_v41  ;;  %v511_v45 = vmul.f32 %v1973_v2, %v423_v44 }
  0x74   : > { %1813 = vst [vmem:[#allocation5] sm:$0xff] %v1781_v24   ;;  %v1801_v42 = vpack.c.bf16 %v507_v31, %v506_v35  ;;  %v434_v48 = vmul.f32 %v2593_v1, %v414_v17  ;;  %v436_v49 = vmul.f32 %v2593_v1, %v416_v18  ;;  %v435_v50 = vmul.f32 %v2593_v1, %v415_v22 }
  0x75   : > { %1815 = vst [vmem:[#allocation5 + $0x20] sm:$0xff] %v1791_v34   ;;  %v1806_v46 = vpack.c.bf16 %v509_v43, %v508_v39  ;;  %v1811_v47 = vpack.c.bf16 %v511_v45, %v510_v40  ;;  %v437_v51 = vmul.f32 %v2593_v1, %v417_v26  ;;  %v439_v52 = vmul.f32 %v2593_v1, %v419_v27 }
  0x76   : > { %1816 = vst [vmem:[#allocation5 + $0x18] sm:$0xff] %v1796_v38   ;;  %v438_v53 = vmul.f32 %v2593_v1, %v418_v32  ;;  %v440_v54 = vmul.f32 %v2593_v1, %v420_v36  ;;  %v442_v55 = vmul.f32 %v2593_v1, %v422_v37  ;;  %v441_v56 = vmul.f32 %v2593_v1, %v421_v41 }
  0x77   : > { %446 = vadd.xlane.f32.xlu0 %v429_v28  ;;  %450 = vadd.xlane.f32.xlu1 %v431_v33  ;;  %1817 = vst [vmem:[#allocation5 + $0x8] sm:$0xff] %v1801_v42   ;;  %v443_v57 = vmul.f32 %v2593_v1, %v423_v44 }
  0x78   : > { %1818 = vst [vmem:[#allocation5 + $0x38] sm:$0xff] %v1806_v46  }
  0x79   : > { %454 = vadd.xlane.f32.xlu2 %v433_v29  ;;  %1819 = vst [vmem:[#allocation5 + $0x30] sm:$0xff] %v1811_v47  }
  0x7a   : > { %364 = vst.msk [vmem:[#allocation2 + $0x20] sm:$0xff] %vm359_vm0, %v2313_v58 }
  0x7b   : > { %365 = vst.msk [vmem:[#allocation2 + $0x28] sm:$0xff] %vm359_vm0, %v2313_v58 }
  0x7c   : > { %366 = vst.msk [vmem:[#allocation2 + $0x30] sm:$0xff] %vm359_vm0, %v2313_v58 }
  0x7d   : > { %367 = vst.msk [vmem:[#allocation2 + $0x38] sm:$0xff] %vm359_vm0, %v2313_v58 }
  0x7e   : > { %368 = vst.msk [vmem:[#allocation2 + $0x40] sm:$0xff] %vm359_vm0, %v2313_v58 }
  0x7f   : > { %456 = vadd.xlane.f32.xlu0 %v434_v48  ;;  %458 = vadd.xlane.f32.xlu1 %v435_v50  ;;  %369 = vst.msk [vmem:[#allocation2 + $0x48] sm:$0xff] %vm359_vm0, %v2313_v58 }
  0x80   : > { %370 = vst.msk [vmem:[#allocation2 + $0x50] sm:$0xff] %vm359_vm0, %v2313_v58 }
  0x81   : > { %460 = vadd.xlane.f32.xlu2 %v436_v49  ;;  %371 = vst.msk [vmem:[#allocation2 + $0x58] sm:$0xff] %vm359_vm0, %v2313_v58 }
  0x82   : > { %372 = vst.msk [vmem:[#allocation2 + $0x60] sm:$0xff] %vm359_vm0, %v2313_v58 }
  0x83   : > { %373 = vst.msk [vmem:[#allocation2 + $0x68] sm:$0xff] %vm359_vm0, %v2313_v58 }
  0x84   : > { %374 = vst.msk [vmem:[#allocation2 + $0x70] sm:$0xff] %vm359_vm0, %v2313_v58 }
  0x85   : > { %375 = vst.msk [vmem:[#allocation2 + $0x78] sm:$0xff] %vm359_vm0, %v2313_v58 }
  0x86   : > { %376 = vst.msk [vmem:[#allocation3] sm:$0xff] %vm359_vm0, %v2314_v59 }
  0x87   : > { %462 = vadd.xlane.f32.xlu0 %v437_v51  ;;  %464 = vadd.xlane.f32.xlu1 %v438_v53  ;;  %377 = vst.msk [vmem:[#allocation3 + $0x8] sm:$0xff] %vm359_vm0, %v2314_v59 }
  0x88   : > { %378 = vst.msk [vmem:[#allocation3 + $0x10] sm:$0xff] %vm359_vm0, %v2314_v59 }
  0x89   : > { %466 = vadd.xlane.f32.xlu2 %v439_v52  ;;  %379 = vst.msk [vmem:[#allocation3 + $0x18] sm:$0xff] %vm359_vm0, %v2314_v59 }
  0x8a   : > { %380 = vst.msk [vmem:[#allocation3 + $0x20] sm:$0xff] %vm359_vm0, %v2314_v59 }
  0x8b   : > { %381 = vst.msk [vmem:[#allocation3 + $0x28] sm:$0xff] %vm359_vm0, %v2314_v59 }
  0x8c   : > { %382 = vst.msk [vmem:[#allocation3 + $0x30] sm:$0xff] %vm359_vm0, %v2314_v59 }
  0x8d   : > { %383 = vst.msk [vmem:[#allocation3 + $0x38] sm:$0xff] %vm359_vm0, %v2314_v59 }
  0x8e   : > { %384 = vst.msk [vmem:[#allocation3 + $0x40] sm:$0xff] %vm359_vm0, %v2314_v59 }
  0x8f   : > { %468 = vadd.xlane.f32.xlu0 %v440_v54  ;;  %470 = vadd.xlane.f32.xlu1 %v441_v56  ;;  %385 = vst.msk [vmem:[#allocation3 + $0x48] sm:$0xff] %vm359_vm0, %v2314_v59 }
  0x90   : > { %386 = vst.msk [vmem:[#allocation3 + $0x50] sm:$0xff] %vm359_vm0, %v2314_v59 }
  0x91   : > { %472 = vadd.xlane.f32.xlu2 %v442_v55  ;;  %387 = vst.msk [vmem:[#allocation3 + $0x58] sm:$0xff] %vm359_vm0, %v2314_v59 }
  0x92   : > { %388 = vst.msk [vmem:[#allocation3 + $0x60] sm:$0xff] %vm359_vm0, %v2314_v59 }
  0x93   : > { %389 = vst.msk [vmem:[#allocation3 + $0x68] sm:$0xff] %vm359_vm0, %v2314_v59 }
  0x94   : > { %390 = vst.msk [vmem:[#allocation3 + $0x70] sm:$0xff] %vm359_vm0, %v2314_v59 }
  0x95   : > { %391 = vst.msk [vmem:[#allocation3 + $0x78] sm:$0xff] %vm359_vm0, %v2314_v59 }
  0x96   : > { %392 = vst [vmem:[#allocation4 + $0x30] sm:$0xff] %v2314_v59 }
  0x97   : > { %474 = vadd.xlane.f32.xlu0 %v443_v57  ;;  %393 = vst [vmem:[#allocation4] sm:$0xff] %v2314_v59 }
  0x98   : > { %394 = vst [vmem:[#allocation4 + $0x58] sm:$0xff] %v2314_v59 }
  0x99   : > { %395 = vst [vmem:[#allocation4 + $0x18] sm:$0xff] %v2314_v59 }
  0x9a   : > { %396 = vst [vmem:[#allocation4 + $0x50] sm:$0xff] %v2314_v59 }
  0x9b   : > { %397 = vst [vmem:[#allocation4 + $0x68] sm:$0xff] %v2314_v59 }
  0x9c   : > { %398 = vst [vmem:[#allocation4 + $0x8] sm:$0xff] %v2314_v59 }
  0x9d   : > { %399 = vst [vmem:[#allocation4 + $0x48] sm:$0xff] %v2314_v59 }
  0x9e   : > { %400 = vst [vmem:[#allocation4 + $0x40] sm:$0xff] %v2314_v59 }
  0x9f   : > { %401 = vst [vmem:[#allocation4 + $0x20] sm:$0xff] %v2314_v59 }
  0xa0   : > { %402 = vst [vmem:[#allocation4 + $0x10] sm:$0xff] %v2314_v59 }
  0xa1   : > { %403 = vst [vmem:[#allocation4 + $0x38] sm:$0xff] %v2314_v59 }
  0xa2   : > { %404 = vst [vmem:[#allocation4 + $0x60] sm:$0xff] %v2314_v59 }
  0xa3   : > { %405 = vst [vmem:[#allocation4 + $0x70] sm:$0xff] %v2314_v59 }
  0xa4   : > { %406 = vst [vmem:[#allocation4 + $0x78] sm:$0xff] %v2314_v59 }
  0xa5   : > { %407 = vst [vmem:[#allocation4 + $0x28] sm:$0xff] %v2314_v59 }
  0xe2   : > { %v445_v60 = vpop.xlane.xlu0 %444  ;;  %v449_v62 = vpop.xlane.xlu1 %448 }
  0xe3   : > { %476 = vst.msk [vmem:[#allocation6] sm:$0xff] %vm359_vm0, %v445_v60 }
  0xe4   : > { %v453_v61 = vpop.xlane.xlu2 %452  ;;  %478 = vst.msk [vmem:[#allocation6 + $0x10] sm:$0xff] %vm359_vm0, %v449_v62 }
  0xe5   : > { %480 = vst.msk [vmem:[#allocation6 + $0x20] sm:$0xff] %vm359_vm0, %v453_v61 }
  0xea   : > { %v447_v63 = vpop.xlane.xlu0 %446  ;;  %v451_v1 = vpop.xlane.xlu1 %450 }
  0xeb   : > { %477 = vst.msk [vmem:[#allocation6 + $0x8] sm:$0xff] %vm359_vm0, %v447_v63 }
  0xec   : > { %v455_v0 = vpop.xlane.xlu2 %454  ;;  %479 = vst.msk [vmem:[#allocation6 + $0x18] sm:$0xff] %vm359_vm0, %v451_v1 }
  0xed   : > { %481 = vst.msk [vmem:[#allocation6 + $0x28] sm:$0xff] %vm359_vm0, %v455_v0 }
  0xf2   : > { %v457_v2 = vpop.xlane.xlu0 %456  ;;  %v459_v4 = vpop.xlane.xlu1 %458 }
  0xf3   : > { %482 = vst.msk [vmem:[#allocation6 + $0x30] sm:$0xff] %vm359_vm0, %v457_v2 }
  0xf4   : > { %v461_v3 = vpop.xlane.xlu2 %460  ;;  %483 = vst.msk [vmem:[#allocation6 + $0x38] sm:$0xff] %vm359_vm0, %v459_v4 }
  0xf5   : > { %484 = vst.msk [vmem:[#allocation6 + $0x40] sm:$0xff] %vm359_vm0, %v461_v3 }
  0xfa   : > { %v463_v5 = vpop.xlane.xlu0 %462  ;;  %v465_v7 = vpop.xlane.xlu1 %464 }
  0xfb   : > { %485 = vst.msk [vmem:[#allocation6 + $0x48] sm:$0xff] %vm359_vm0, %v463_v5 }
  0xfc   : > { %v467_v6 = vpop.xlane.xlu2 %466  ;;  %486 = vst.msk [vmem:[#allocation6 + $0x50] sm:$0xff] %vm359_vm0, %v465_v7 }
  0xfd   : > { %487 = vst.msk [vmem:[#allocation6 + $0x58] sm:$0xff] %vm359_vm0, %v467_v6 }
 0x102   : > { %v469_v8 = vpop.xlane.xlu0 %468  ;;  %v471_v10 = vpop.xlane.xlu1 %470 }
 0x103   : > { %488 = vst.msk [vmem:[#allocation6 + $0x60] sm:$0xff] %vm359_vm0, %v469_v8 }
 0x104   : > { %v473_v9 = vpop.xlane.xlu2 %472  ;;  %489 = vst.msk [vmem:[#allocation6 + $0x68] sm:$0xff] %vm359_vm0, %v471_v10 }
 0x105   : > { %490 = vst.msk [vmem:[#allocation6 + $0x70] sm:$0xff] %vm359_vm0, %v473_v9 }
 0x10a   : > { %v475_v11 = vpop.xlane.xlu0 %474 }
 0x10b   : > { %491 = vst.msk [vmem:[#allocation6 + $0x78] sm:$0xff] %vm359_vm0, %v475_v11 }
 0x10c PF: > { %v558_v12 = vld [vmem:[%s2577_s28 + $0x70] sm:$0xff]  ;;  %v559_v13 = vld [vmem:[%s2577_s28 + $0x78] sm:$0xff]  ;;  %v556_v15 = vld [vmem:[%s2577_s28 + $0x60] sm:$0xff]  ;;  %v2315_v28 = vmov 0   ;;  %vm1117_vm1 = vcmask 7168   ;;  %s3231_s1 = sld [smem:[#allocation20_spill]] }
 0x10d   : > { %v567_v14 = vpack.c.bf16 %v559_v13, %v558_v12  ;;  %v557_v16 = vld [vmem:[%s2577_s28 + $0x68] sm:$0xff]  ;;  %v554_v18 = vld [vmem:[%s2577_s28 + $0x50] sm:$0xff]  ;;  %v555_v19 = vld [vmem:[%s2577_s28 + $0x58] sm:$0xff]  ;;  %1974 = vset.pattern.permute.xlu0 %v2315_v28  ;;  %1975 = vset.pattern.permute.xlu1 %v2315_v28 }
 0x10e   : > { %v566_v17 = vpack.c.bf16 %v557_v16, %v556_v15  ;;  %v565_v20 = vpack.c.bf16 %v555_v19, %v554_v18  ;;  %v552_v21 = vld [vmem:[%s2577_s28 + $0x40] sm:$0xff]  ;;  %v553_v22 = vld [vmem:[%s2577_s28 + $0x48] sm:$0xff]  ;;  %v550_v24 = vld [vmem:[%s2577_s28 + $0x30] sm:$0xff]  ;;  %1976 = vset.pattern.permute.xlu2 %v2315_v28 }
 0x10f   : > { %728 = vmatpush.bf16.xpose.msra.mxu0 %v567_v14  ;;  %1820 = vmatpush.bf16.xpose.msra.mxu2 %v567_v14  ;;  %v564_v23 = vpack.c.bf16 %v553_v22, %v552_v21  ;;  %v551_v25 = vld [vmem:[%s2577_s28 + $0x38] sm:$0xff]  ;;  %v584_v26 = vld [vmem:[#allocation6] sm:$0xff]  ;;  %v549_v30 = vld [vmem:[%s2577_s28 + $0x28] sm:$0xff] }
 0x110   : > { %1254 = vmatpush.bf16.msra.mxu1 %v567_v14  ;;  %1828 = vmatpush.bf16.msra.mxu3 %v567_v14  ;;  %v563_v27 = vpack.c.bf16 %v551_v25, %v550_v24  ;;  %v548_v29 = vld [vmem:[%s2577_s28 + $0x20] sm:$0xff]  ;;  %v546_v32 = vld [vmem:[%s2577_s28 + $0x10] sm:$0xff]  ;;  %v547_v33 = vld [vmem:[%s2577_s28 + $0x18] sm:$0xff] }
 0x111   : > { %602 = vperm.xlu0 %1974, %v584_v26   ;;  %v562_v31 = vpack.c.bf16 %v549_v30, %v548_v29  ;;  %v585_v34 = vld [vmem:[#allocation6 + $0x8] sm:$0xff]  ;;  %v561_v35 = vpack.c.bf16 %v547_v33, %v546_v32  ;;  %v544_v36 = vld [vmem:[%s2577_s28] sm:$0xff]  ;;  %v586_v39 = vld [vmem:[#allocation6 + $0x10] sm:$0xff] }
 0x112   : > { %v545_v37 = vld [vmem:[%s2577_s28 + $0x8] sm:$0xff]  ;;  %v590_v40 = vld [vmem:[#allocation6 + $0x30] sm:$0xff]  ;;  %612 = vperm.xlu1 %1975, %v586_v39   ;;  %v587_v41 = vld [vmem:[#allocation6 + $0x18] sm:$0xff]  ;;  %p1756_p6 = scmp.ne.s32.totalorder %s3231_s1, 1 }
 0x113   : > { %v560_v38 = vpack.c.bf16 %v545_v37, %v544_v36  ;;  %v593_v42 = vld [vmem:[#allocation6 + $0x48] sm:$0xff]  ;;  %v591_v43 = vld [vmem:[#allocation6 + $0x38] sm:$0xff]  ;;  %v588_v44 = vld [vmem:[#allocation6 + $0x20] sm:$0xff] }
 0x114   : > { %1255 = vmatpush.bf16.msra.mxu1 %v566_v17  ;;  %1829 = vmatpush.bf16.msra.mxu3 %v566_v17  ;;  %v596_v45 = vld [vmem:[#allocation6 + $0x60] sm:$0xff]  ;;  %v594_v46 = vld [vmem:[#allocation6 + $0x50] sm:$0xff]  ;;  %v589_v47 = vld [vmem:[#allocation6 + $0x28] sm:$0xff] }
 0x115   : > { %622 = vperm.xlu2 %1976, %v588_v44   ;;  %v599_v48 = vld [vmem:[#allocation6 + $0x78] sm:$0xff]  ;;  %v1764_v49 = vld [vmem:[#allocation5 + $0x28] sm:$0xff]  ;;  %v1767_v50 = vld [vmem:[#allocation5 + $0x20] sm:$0xff] }
 0x116   : > { %v597_v51 = vld [vmem:[#allocation6 + $0x68] sm:$0xff]  ;;  %v592_v52 = vld [vmem:[#allocation6 + $0x40] sm:$0xff]  ;;  %v595_v53 = vld [vmem:[#allocation6 + $0x58] sm:$0xff] }
 0x117   : > { %729 = vmatpush.bf16.xpose.msra.mxu0 %v566_v17  ;;  %1821 = vmatpush.bf16.xpose.msra.mxu2 %v566_v17  ;;  %v1765_v54 = vld [vmem:[#allocation5] sm:$0xff]  ;;  %v1768_v55 = vld [vmem:[#allocation5 + $0x18] sm:$0xff]  ;;  %v598_v56 = vld [vmem:[#allocation6 + $0x70] sm:$0xff] }
 0x118   : > { %1256 = vmatpush.bf16.msra.mxu1 %v565_v20  ;;  %1830 = vmatpush.bf16.msra.mxu3 %v565_v20  ;;  %v1766_v57 = vld [vmem:[#allocation5 + $0x10] sm:$0xff]  ;;  %v1769_v58 = vld [vmem:[#allocation5 + $0x8] sm:$0xff]  ;;  %v1770_v59 = vld [vmem:[#allocation5 + $0x38] sm:$0xff] }
 0x119   : > { %607 = vperm.xlu0 %1974, %v585_v34   ;;  %v1771_v60 = vld [vmem:[#allocation5 + $0x30] sm:$0xff]  ;;  %v2694_v0 = vld [vmem:[%s2584_s12] ss:$0 sm:$0xff] }
 0x11a   : > { %617 = vperm.xlu1 %1975, %v587_v41  }
 0x11c   : > { %1257 = vmatpush.bf16.msra.mxu1 %v564_v23  ;;  %1831 = vmatpush.bf16.msra.mxu3 %v564_v23 }
 0x11d   : > { %627 = vperm.xlu2 %1976, %v589_v47  }
 0x11f   : > { %730 = vmatpush.bf16.xpose.msra.mxu0 %v565_v20  ;;  %1822 = vmatpush.bf16.xpose.msra.mxu2 %v565_v20 }
 0x120   : > { %1258 = vmatpush.bf16.msra.mxu1 %v563_v27  ;;  %1832 = vmatpush.bf16.msra.mxu3 %v563_v27 }
 0x121   : > { %632 = vperm.xlu0 %1974, %v590_v40  }
 0x122   : > { %637 = vperm.xlu1 %1975, %v591_v43  }
 0x124   : > { %1259 = vmatpush.bf16.msra.mxu1 %v562_v31  ;;  %1833 = vmatpush.bf16.msra.mxu3 %v562_v31 }
 0x125   : > { %642 = vperm.xlu2 %1976, %v592_v52  }
 0x127   : > { %731 = vmatpush.bf16.xpose.msra.mxu0 %v564_v23  ;;  %1823 = vmatpush.bf16.xpose.msra.mxu2 %v564_v23 }
 0x128   : > { %1260 = vmatpush.bf16.msra.mxu1 %v561_v35  ;;  %1834 = vmatpush.bf16.msra.mxu3 %v561_v35 }
 0x129   : > { %647 = vperm.xlu0 %1974, %v593_v42  }
 0x12a   : > { %652 = vperm.xlu1 %1975, %v594_v46  }
 0x12c   : > { %1261 = vmatpush.bf16.msra.mxu1 %v560_v38  ;;  %1835 = vmatpush.bf16.msra.mxu3 %v560_v38 }
 0x12d   : > { %657 = vperm.xlu2 %1976, %v595_v53  }
 0x12f   : > { %732 = vmatpush.bf16.xpose.msra.mxu0 %v563_v27  ;;  %1824 = vmatpush.bf16.xpose.msra.mxu2 %v563_v27 }
 0x131   : > { %662 = vperm.xlu0 %1974, %v596_v45  }
 0x132   : > { %667 = vperm.xlu1 %1975, %v597_v51  }
 0x135   : > { %672 = vperm.xlu2 %1976, %v598_v56  }
 0x137   : > { %733 = vmatpush.bf16.xpose.msra.mxu0 %v562_v31  ;;  %1825 = vmatpush.bf16.xpose.msra.mxu2 %v562_v31 }
 0x139   : > { %677 = vperm.xlu0 %1974, %v599_v48  }
 0x13f   : > { %734 = vmatpush.bf16.xpose.msra.mxu0 %v561_v35  ;;  %1826 = vmatpush.bf16.xpose.msra.mxu2 %v561_v35 }
 0x147   : > { %735 = vmatpush.bf16.xpose.msra.mxu0 %v560_v38  ;;  %1827 = vmatpush.bf16.xpose.msra.mxu2 %v560_v38 }
 0x14e   : > { %736 = vmatmul.bf16.vlgmr.msra.gmra.mxu0 %v1764_v49  ;;  %751 = vmatmul.bf16.vlgmr.msra.gmra.mxu2 %v1767_v50 }
 0x15e   : > { %741 = vmatmul.bf16.gmra.mxu0 %v1765_v54  ;;  %756 = vmatmul.bf16.gmra.mxu2 %v1768_v55 }
 0x16e   : > { %746 = vmatmul.bf16.gmra.mxu0 %v1766_v57  ;;  %761 = vmatmul.bf16.gmra.mxu2 %v1769_v58 }
 0x16f   : > { %v623_v3 = vpop.permute.xlu2 %622 }
 0x177   : > { %v628_v13 = vpop.permute.xlu2 %627 }
 0x17e   : > { %766 = vmatmul.bf16.gmra.mxu2 %v1770_v59 }
 0x17f   : > { %v643_v21 = vpop.permute.xlu2 %642 }
 0x183   : > { %v603_v61 = vpop.permute.xlu0 %602 }
 0x184   : > { %v613_v62 = vpop.permute.xlu1 %612 }
 0x187   : > { %v658_v42 = vpop.permute.xlu2 %657 }
 0x18b   : > { %v608_v63 = vpop.permute.xlu0 %607 }
 0x18c   : > { %v618_v5 = vpop.permute.xlu1 %617 }
 0x18e   : > { %771 = vmatmul.bf16.gmra.mxu2 %v1771_v60 }
 0x18f   : > { %v673_v54 = vpop.permute.xlu2 %672 }
 0x193   : > { %v633_v6 = vpop.permute.xlu0 %632 }
 0x194   : > { %v638_v14 = vpop.permute.xlu1 %637 }
 0x19b   : > { %v648_v27 = vpop.permute.xlu0 %647 }
 0x19c   : > { %v653_v35 = vpop.permute.xlu1 %652 }
 0x1a3   : > { %v663_v46 = vpop.permute.xlu0 %662 }
 0x1a4   : > { %v668_v50 = vpop.permute.xlu1 %667 }
 0x1ab   : > { %v678_v58 = vpop.permute.xlu0 %677 }
 0x1cb   : > { %v737_v1 = vpop.f32.mrf.mxu0 }
 0x1cc   : > { %v738_v2 = vadd.f32 %v737_v1, %v603_v61 }
 0x1ce   : > { %v2697_v4 = vadd.f32 %v2694_v0, %v738_v2  ;;  %v2768_v2 = vld [vmem:[#allocation2 + $0x30] sm:$0xff] }
 0x1d0   : > { %813 = vmax.xlane.f32.xlu1 %v2697_v4 }
 0x1d1   : > { %v752_v7 = vpop.f32.mrf.mxu2 }
 0x1d2   : > { %v753_v8 = vadd.f32 %v752_v7, %v633_v6 }
 0x1d3   : > { %v739_v9 = vpop.f32.mrf.mxu0 }
 0x1d4   : > { %v740_v10 = vadd.f32 %v739_v9, %v608_v63  ;;  %v2701_v11 = vadd.f32 %v2694_v0, %v753_v8 }
 0x1d6   : > { %825 = vmax.xlane.f32.xlu0 %v2701_v11  ;;  %v2705_v12 = vadd.f32 %v2694_v0, %v740_v10  ;;  %v2787_v10 = vld [vmem:[#allocation2 + $0x38] sm:$0xff] }
 0x1d8   : > { %815 = vmax.xlane.f32.xlu2 %v2705_v12 }
 0x1d9   : > { %v754_v15 = vpop.f32.mrf.mxu2 }
 0x1da   : > { %v755_v16 = vadd.f32 %v754_v15, %v638_v14  ;;  %v2789_v14 = vld [vmem:[#allocation2 + $0x10] sm:$0xff] }
 0x1db   : > { %v742_v17 = vpop.f32.mrf.mxu0 }
 0x1dc   : > { %v743_v18 = vadd.f32 %v742_v17, %v613_v62  ;;  %v2709_v19 = vadd.f32 %v2694_v0, %v755_v16  ;;  %v2760_v62 = vld [vmem:[#allocation2] sm:$0xff] }
 0x1de   : > { %827 = vmax.xlane.f32.xlu1 %v2709_v19  ;;  %v2713_v20 = vadd.f32 %v2694_v0, %v743_v18 }
 0x1e0   : > { %817 = vmax.xlane.f32.xlu0 %v2713_v20 }
 0x1e1   : > { %v757_v22 = vpop.f32.mrf.mxu2 }
 0x1e2   : > { %v758_v23 = vadd.f32 %v757_v22, %v643_v21  ;;  %v2804_v21 = vld [vmem:[#allocation2 + $0x40] sm:$0xff] }
 0x1e3   : > { %v744_v24 = vpop.f32.mrf.mxu0 }
 0x1e4   : > { %v2717_v25 = vadd.f32 %v2694_v0, %v758_v23  ;;  %v745_v26 = vadd.f32 %v744_v24, %v618_v5  ;;  %v2770_v5 = vld [vmem:[#allocation2 + $0x8] sm:$0xff] }
 0x1e6   : > { %829 = vmax.xlane.f32.xlu2 %v2717_v25  ;;  %v2724_v33 = vadd.f32 %v2694_v0, %v745_v26  ;;  %v2813_v26 = vld [vmem:[#allocation2 + $0x48] sm:$0xff] }
 0x1e9   : > { %v759_v28 = vpop.f32.mrf.mxu2 }
 0x1ea   : > { %v760_v29 = vadd.f32 %v759_v28, %v648_v27  ;;  %v800_v27 = vld [vmem:[#allocation2 + $0x18] sm:$0xff] }
 0x1eb   : > { %v747_v30 = vpop.f32.mrf.mxu0 }
 0x1ec   : > { %v748_v31 = vadd.f32 %v747_v30, %v623_v3  ;;  %v2721_v32 = vadd.f32 %v2694_v0, %v760_v29  ;;  %v2815_v30 = vld [vmem:[#allocation2 + $0x20] sm:$0xff] }
 0x1ee   : > { %831 = vmax.xlane.f32.xlu0 %v2721_v32  ;;  %819 = vmax.xlane.f32.xlu2 %v2724_v33  ;;  %v2729_v34 = vadd.f32 %v2694_v0, %v748_v31 }
 0x1f0   : > { %821 = vmax.xlane.f32.xlu1 %v2729_v34 }
 0x1f1   : > { %v762_v36 = vpop.f32.mrf.mxu2 }
 0x1f2   : > { %v763_v37 = vadd.f32 %v762_v36, %v653_v35 }
 0x1f3   : > { %v749_v38 = vpop.f32.mrf.mxu0 }
 0x1f4   : > { %v750_v39 = vadd.f32 %v749_v38, %v628_v13  ;;  %v2736_v41 = vadd.f32 %v2694_v0, %v763_v37  ;;  %v2829_v38 = vld [vmem:[#allocation2 + $0x28] sm:$0xff] }
 0x1f6   : > { %v2733_v40 = vadd.f32 %v2694_v0, %v750_v39  ;;  %v2831_v39 = vld [vmem:[#allocation2 + $0x50] sm:$0xff] }
 0x1f8   : > { %823 = vmax.xlane.f32.xlu2 %v2733_v40  ;;  %833 = vmax.xlane.f32.xlu1 %v2736_v41 }
 0x1f9   : > { %v764_v43 = vpop.f32.mrf.mxu2 }
 0x1fa   : > { %v765_v44 = vadd.f32 %v764_v43, %v658_v42 }
 0x1fc   : > { %v2741_v45 = vadd.f32 %v2694_v0, %v765_v44 }
 0x200   : > { %835 = vmax.xlane.f32.xlu2 %v2741_v45 }
 0x201   : > { %v767_v47 = vpop.f32.mrf.mxu2 }
 0x202   : > { %v768_v48 = vadd.f32 %v767_v47, %v663_v46  ;;  %v2841_v47 = vld [vmem:[#allocation2 + $0x58] sm:$0xff] }
 0x204   : > { %v2745_v49 = vadd.f32 %v2694_v0, %v768_v48 }
 0x206   : > { %837 = vmax.xlane.f32.xlu0 %v2745_v49 }
 0x209   : > { %v769_v51 = vpop.f32.mrf.mxu2 }
 0x20a   : > { %v770_v52 = vadd.f32 %v769_v51, %v668_v50  ;;  %v2850_v51 = vld [vmem:[#allocation2 + $0x60] sm:$0xff] }
 0x20c   : > { %v2749_v53 = vadd.f32 %v2694_v0, %v770_v52 }
 0x20e   : > { %839 = vmax.xlane.f32.xlu1 %v2749_v53 }
 0x211   : > { %v772_v55 = vpop.f32.mrf.mxu2 }
 0x212   : > { %v773_v56 = vadd.f32 %v772_v55, %v673_v54 }
 0x214   : > { %v2753_v57 = vadd.f32 %v2694_v0, %v773_v56  ;;  %v2857_v56 = vld [vmem:[#allocation2 + $0x68] sm:$0xff] }
 0x216   : > { %841 = vmax.xlane.f32.xlu2 %v2753_v57 }
 0x219   : > { %v774_v59 = vpop.f32.mrf.mxu2 }
 0x21a   : > { %v775_v60 = vadd.f32 %v774_v59, %v678_v58 }
 0x21c   : > { %v2757_v61 = vadd.f32 %v2694_v0, %v775_v60 }
 0x21e   : > { %843 = vmax.xlane.f32.xlu0 %v2757_v61 }
 0x243   : > { %v814_v63 = vpop.xlane.xlu1 %813 }
 0x244   : > { %v2763_v1 = vmax.f32 %v2760_v62, %v814_v63 }
 0x246   : > { %1335 = vst.msk [vmem:[#allocation2] sm:$0xff] %vm1117_vm1, %v2763_v1  ;;  %911 = vperm.xlu1 %1975, %v2763_v1   ;;  %v861_v55 = vsub.f32 %v2760_v62, %v2763_v1  ;;  %v2868_v62 = vld [vmem:[#allocation2 + $0x70] sm:$0xff] }
 0x248   : > { %v877_v60 = vmul.f32 1.442695, %v861_v55 }
 0x249   : > { %v826_v3 = vpop.xlane.xlu0 %825 }
 0x24a   : > { %v2773_v0 = vmax.f32 %v2768_v2, %v826_v3  ;;  %1978 = vpow2.f32 %v877_v60 }
 0x24b   : > { %v816_v6 = vpop.xlane.xlu2 %815 }
 0x24c   : > { %v867_v7 = vsub.f32 %v2768_v2, %v2773_v0  ;;  %1341 = vst.msk [vmem:[#allocation2 + $0x30] sm:$0xff] %vm1117_vm1, %v2773_v0  ;;  %v2780_v8 = vmax.f32 %v2770_v5, %v816_v6 }
 0x24e   : > { %v862_v9 = vsub.f32 %v2770_v5, %v2780_v8  ;;  %1336 = vst.msk [vmem:[#allocation2 + $0x8] sm:$0xff] %vm1117_vm1, %v2780_v8  ;;  %916 = vperm.xlu2 %1976, %v2780_v8  }
 0x251   : > { %v828_v13 = vpop.xlane.xlu1 %827 }
 0x252   : > { %v2792_v15 = vmax.f32 %v2787_v10, %v828_v13 }
 0x253   : > { %v818_v16 = vpop.xlane.xlu0 %817 }
 0x254   : > { %v868_v17 = vsub.f32 %v2787_v10, %v2792_v15  ;;  %1342 = vst.msk [vmem:[#allocation2 + $0x38] sm:$0xff] %vm1117_vm1, %v2792_v15  ;;  %v2799_v18 = vmax.f32 %v2789_v14, %v818_v16 }
 0x256   : > { %1337 = vst.msk [vmem:[#allocation2 + $0x10] sm:$0xff] %vm1117_vm1, %v2799_v18  ;;  %921 = vperm.xlu0 %1974, %v2799_v18  }
 0x259   : > { %v830_v22 = vpop.xlane.xlu2 %829 }
 0x25a   : > { %v2807_v23 = vmax.f32 %v2804_v21, %v830_v22  ;;  %v2878_v22 = vpop.eup %1978 }
 0x25c   : > { %v869_v24 = vsub.f32 %v2804_v21, %v2807_v23  ;;  %1343 = vst.msk [vmem:[#allocation2 + $0x40] sm:$0xff] %vm1117_vm1, %v2807_v23 }
 0x261   : > { %v832_v28 = vpop.xlane.xlu0 %831  ;;  %v820_v29 = vpop.xlane.xlu2 %819 }
 0x262   : > { %v2818_v31 = vmax.f32 %v2813_v26, %v832_v28  ;;  %v848_v35 = vmax.f32 %v800_v27, %v820_v29  ;;  %v2883_v28 = vld [vmem:[#allocation2 + $0x78] sm:$0xff]  ;;  %v879_v29 = vmul.f32 1.442695, %v862_v9 }
 0x263   : > { %v822_v36 = vpop.xlane.xlu1 %821 }
 0x264   : > { %1344 = vst.msk [vmem:[#allocation2 + $0x48] sm:$0xff] %vm1117_vm1, %v2818_v31  ;;  %v2823_v37 = vmax.f32 %v2815_v30, %v822_v36  ;;  %926 = vperm.xlu1 %1975, %v848_v35   ;;  %v864_v3 = vsub.f32 %v800_v27, %v848_v35  ;;  %v863_v27 = vsub.f32 %v2789_v14, %v2799_v18 }
 0x265   : > { %1338 = vst.msk [vmem:[#allocation2 + $0x18] sm:$0xff] %vm1117_vm1, %v848_v35 }
 0x266   : > { %1339 = vst.msk [vmem:[#allocation2 + $0x20] sm:$0xff] %vm1117_vm1, %v2823_v37  ;;  %931 = vperm.xlu0 %1974, %v2823_v37   ;;  %v883_v13 = vmul.f32 1.442695, %v864_v3  ;;  %v881_v35 = vmul.f32 1.442695, %v863_v27  ;;  %v865_v14 = vsub.f32 %v2815_v30, %v2823_v37 }
 0x268   : > { %1980 = vpow2.f32 %v883_v13 }
 0x269   : > { %1982 = vpow2.f32 %v879_v29 }
 0x26a   : > { %1984 = vpow2.f32 %v881_v35 }
 0x26b   : > { %v824_v42 = vpop.xlane.xlu2 %823  ;;  %v834_v43 = vpop.xlane.xlu1 %833 }
 0x26c   : > { %v850_v44 = vmax.f32 %v2829_v38, %v824_v42  ;;  %v2835_v46 = vmax.f32 %v2831_v39, %v834_v43  ;;  %v889_v43 = vmul.f32 1.442695, %v867_v7  ;;  %v885_v7 = vmul.f32 1.442695, %v865_v14 }
 0x26e   : > { %1340 = vst.msk [vmem:[#allocation2 + $0x28] sm:$0xff] %vm1117_vm1, %v850_v44  ;;  %936 = vperm.xlu2 %1976, %v850_v44   ;;  %961 = vperm.xlu1 %1975, %v2835_v46   ;;  %v2902_v5 = vpop.eup %1980  ;;  %v866_v2 = vsub.f32 %v2829_v38, %v850_v44  ;;  %1986 = vpow2.f32 %v889_v43  ;;  %v893_v38 = vmul.f32 1.442695, %v869_v24 }
 0x26f   : > { %1345 = vst.msk [vmem:[#allocation2 + $0x50] sm:$0xff] %vm1117_vm1, %v2835_v46  ;;  %v2908_v9 = vpop.eup %1982  ;;  %1988 = vpow2.f32 %v885_v7 }
 0x270   : > { %v887_v8 = vmul.f32 1.442695, %v866_v2  ;;  %v2910_v30 = vpop.eup %1984 }
 0x272   : > { %1990 = vpow2.f32 %v887_v8 }
 0x273   : > { %v836_v48 = vpop.xlane.xlu2 %835 }
 0x274   : > { %v2844_v50 = vmax.f32 %v2841_v47, %v836_v48  ;;  %v2914_v48 = vpop.eup %1986 }
 0x275   : > { %v2924_v44 = vpop.eup %1988 }
 0x276   : > { %1346 = vst.msk [vmem:[#allocation2 + $0x58] sm:$0xff] %vm1117_vm1, %v2844_v50  ;;  %941 = vperm.xlu2 %1976, %v2773_v0   ;;  %966 = vperm.xlu0 %1974, %v2844_v50   ;;  %v870_v0 = vsub.f32 %v2813_v26, %v2818_v31  ;;  %v872_v10 = vsub.f32 %v2841_v47, %v2844_v50 }
 0x278   : > { %v895_v37 = vmul.f32 1.442695, %v870_v0 }
 0x279   : > { %v838_v52 = vpop.xlane.xlu0 %837 }
 0x27a   : > { %v857_v54 = vmax.f32 %v2850_v51, %v838_v52  ;;  %1992 = vpow2.f32 %v895_v37  ;;  %v2926_v52 = vpop.eup %1990 }
 0x27c   : > { %1347 = vst.msk [vmem:[#allocation2 + $0x60] sm:$0xff] %vm1117_vm1, %v857_v54  ;;  %971 = vperm.xlu1 %1975, %v857_v54   ;;  %v873_v26 = vsub.f32 %v2850_v51, %v857_v54 }
 0x27e   : > { %946 = vperm.xlu2 %1976, %v2792_v15   ;;  %v901_v55 = vmul.f32 1.442695, %v873_v26 }
 0x280   : > { %v2932_v51 = vpop.eup %1992 }
 0x281   : > { %v840_v58 = vpop.xlane.xlu1 %839 }
 0x282   : > { %v2860_v59 = vmax.f32 %v2857_v56, %v840_v58  ;;  %v871_v58 = vsub.f32 %v2831_v39, %v2835_v46 }
 0x284   : > { %v874_v63 = vsub.f32 %v2857_v56, %v2860_v59  ;;  %1348 = vst.msk [vmem:[#allocation2 + $0x68] sm:$0xff] %vm1117_vm1, %v2860_v59  ;;  %976 = vperm.xlu0 %1974, %v2860_v59   ;;  %v897_v15 = vmul.f32 1.442695, %v871_v58 }
 0x286   : > { %951 = vperm.xlu2 %1976, %v2807_v23  }
 0x289   : > { %v842_v1 = vpop.xlane.xlu2 %841 }
 0x28a   : > { %v2871_v6 = vmax.f32 %v2868_v62, %v842_v1 }
 0x28c   : > { %v875_v16 = vsub.f32 %v2868_v62, %v2871_v6  ;;  %1349 = vst.msk [vmem:[#allocation2 + $0x70] sm:$0xff] %vm1117_vm1, %v2871_v6  ;;  %981 = vperm.xlu1 %1975, %v2871_v6   ;;  %v903_v62 = vmul.f32 1.442695, %v874_v63 }
 0x28e   : > { %1152 = vperm.xlu2 %1976, %v2878_v22  }
 0x291   : > { %v844_v36 = vpop.xlane.xlu0 %843 }
 0x292   : > { %v2889_v42 = vmax.f32 %v2883_v28, %v844_v36 }
 0x294   : > { %v876_v18 = vsub.f32 %v2883_v28, %v2889_v42  ;;  %1350 = vst.msk [vmem:[#allocation2 + $0x78] sm:$0xff] %vm1117_vm1, %v2889_v42  ;;  %956 = vperm.xlu1 %1975, %v2818_v31   ;;  %986 = vperm.xlu0 %1974, %v2889_v42   ;;  %v891_v31 = vmul.f32 1.442695, %v868_v17  ;;  %v899_v17 = vmul.f32 1.442695, %v872_v10 }
 0x296   : > { %1167 = vperm.xlu2 %1976, %v2902_v5   ;;  %1994 = vpow2.f32 %v891_v31 }
 0x297   : > { %1996 = vpow2.f32 %v893_v38 }
 0x298   : > { %1998 = vpow2.f32 %v901_v55 }
 0x299   : > { %2000 = vpow2.f32 %v897_v15 }
 0x29a   : > { %2002 = vpow2.f32 %v899_v17 }
 0x29c   : > { %1157 = vperm.xlu1 %1975, %v2908_v9   ;;  %1162 = vperm.xlu0 %1974, %v2910_v30   ;;  %v2937_v21 = vpop.eup %1994 }
 0x29d   : > { %v2939_v23 = vpop.eup %1996 }
 0x29e   : > { %1182 = vperm.xlu2 %1976, %v2914_v48   ;;  %v2943_v24 = vpop.eup %1998 }
 0x29f   : > { %v2946_v46 = vpop.eup %2000 }
 0x2a0   : > { %v2948_v47 = vpop.eup %2002 }
 0x2a4   : > { %1177 = vperm.xlu1 %1975, %v2926_v52   ;;  %1172 = vperm.xlu0 %1974, %v2924_v44  }
 0x2a6   : > { %1197 = vperm.xlu2 %1976, %v2932_v51  }
 0x2a8   : > { %v917_v39 = vpop.permute.xlu2 %916 }
 0x2a9   : > { %v990_v50 = vsub.f32 %v2705_v12, %v917_v39 }
 0x2ab   : > { %v1007_v54 = vmul.f32 1.442695, %v990_v50 }
 0x2ac   : > { %1192 = vperm.xlu1 %1975, %v2939_v23   ;;  %1187 = vperm.xlu0 %1974, %v2937_v21  }
 0x2ad   : > { %2004 = vpow2.f32 %v1007_v54 }
 0x2ae   : > { %1212 = vperm.xlu2 %1976, %v2943_v24  }
 0x2b3   : > { %v2005_v13 = vpop.eup %2004 }
 0x2b4   : > { %1207 = vperm.xlu1 %1975, %v2948_v47   ;;  %1202 = vperm.xlu0 %1974, %v2946_v46  }
 0x2b8   : > { %v912_v60 = vpop.permute.xlu1 %911 }
 0x2b9   : > { %v989_v3 = vsub.f32 %v2697_v4, %v912_v60 }
 0x2bb   : > { %v1005_v1 = vmul.f32 1.442695, %v989_v3 }
 0x2bd   : > { %2006 = vpow2.f32 %v1005_v1 }
 0x2c3   : > { %v2007_v27 = vpop.eup %2006 }
 0x2c4   : > { %v1246_v29 = vpack.c.bf16 %v2005_v13, %v2007_v27 }
 0x2c6   : > { %1262 = vmatmul.bf16.vlgmr.msra.gmra.mxu1 %v1246_v29 }
 0x2c8   : > { %v937_v35 = vpop.permute.xlu2 %936  ;;  %v922_v36 = vpop.permute.xlu0 %921 }
 0x2c9   : > { %v991_v43 = vsub.f32 %v2713_v20, %v922_v36 }
 0x2cb   : > { %v1009_v14 = vmul.f32 1.442695, %v991_v43 }
 0x2cd   : > { %2008 = vpow2.f32 %v1009_v14 }
 0x2d0   : > { %v942_v12 = vpop.permute.xlu2 %941 }
 0x2d1   : > { %v995_v0 = vsub.f32 %v2701_v11, %v942_v12 }
 0x2d3   : > { %v1017_v31 = vmul.f32 1.442695, %v995_v0  ;;  %v2009_v20 = vpop.eup %2008 }
 0x2d6   : > { %v927_v2 = vpop.permute.xlu1 %926 }
 0x2d7   : > { %v992_v7 = vsub.f32 %v2724_v33, %v927_v2  ;;  %1071 = vadd.xlane.f32.xlu2 %v2005_v13 }
 0x2d8   : > { %v947_v4 = vpop.permute.xlu2 %946  ;;  %v932_v26 = vpop.permute.xlu0 %931 }
 0x2d9   : > { %v1011_v8 = vmul.f32 1.442695, %v992_v7  ;;  %v996_v37 = vsub.f32 %v2709_v19, %v947_v4  ;;  %v993_v55 = vsub.f32 %v2729_v34, %v932_v26  ;;  %v994_v19 = vsub.f32 %v2733_v40, %v937_v35 }
 0x2db   : > { %2010 = vpow2.f32 %v1011_v8  ;;  %v1019_v38 = vmul.f32 1.442695, %v996_v37  ;;  %v1013_v58 = vmul.f32 1.442695, %v993_v55  ;;  %v1015_v60 = vmul.f32 1.442695, %v994_v19 }
 0x2dd   : > { %2012 = vpow2.f32 %v1019_v38 }
 0x2de   : > { %1073 = vadd.xlane.f32.xlu1 %v2009_v20  ;;  %1069 = vadd.xlane.f32.xlu0 %v2007_v27  ;;  %2014 = vpow2.f32 %v1017_v31 }
 0x2df   : > { %2016 = vpow2.f32 %v1013_v58 }
 0x2e0   : > { %v952_v11 = vpop.permute.xlu2 %951  ;;  %v962_v15 = vpop.permute.xlu1 %961 }
 0x2e1   : > { %v2011_v10 = vpop.eup %2010  ;;  %v997_v33 = vsub.f32 %v2717_v25, %v952_v11  ;;  %v999_v54 = vsub.f32 %v2736_v41, %v962_v15 }
 0x2e2   : > { %v1247_v17 = vpack.c.bf16 %v2011_v10, %v2009_v20 }
 0x2e3   : > { %v2013_v39 = vpop.eup %2012  ;;  %v1021_v50 = vmul.f32 1.442695, %v997_v33  ;;  %v1025_v3 = vmul.f32 1.442695, %v999_v54 }
 0x2e4   : > { %1083 = vadd.xlane.f32.xlu2 %v2013_v39  ;;  %1267 = vmatmul.bf16.gmra.mxu1 %v1247_v17  ;;  %v2015_v34 = vpop.eup %2014 }
 0x2e5   : > { %2018 = vpow2.f32 %v1021_v50  ;;  %v2017_v25 = vpop.eup %2016  ;;  %v1249_v31 = vpack.c.bf16 %v2013_v39, %v2015_v34 }
 0x2e6   : > { %1081 = vadd.xlane.f32.xlu0 %v2015_v34  ;;  %2020 = vpow2.f32 %v1015_v60 }
 0x2e7   : > { %2022 = vpow2.f32 %v1025_v3 }
 0x2e8   : > { %v967_v1 = vpop.permute.xlu0 %966  ;;  %v1153_v50 = vpop.permute.xlu2 %1152 }
 0x2e9   : > { %v1000_v13 = vsub.f32 %v2741_v45, %v967_v1  ;;  %v1134_v1 = vld [vmem:[#allocation4 + $0x30] sm:$0xff] }
 0x2ea   : > { %v1230_v56 = vmul.f32 %v1153_v50, %v1134_v1 }
 0x2eb   : > { %v2019_v27 = vpop.eup %2018  ;;  %v1027_v29 = vmul.f32 1.442695, %v1000_v13 }
 0x2ec   : > { %1077 = vadd.xlane.f32.xlu2 %v2017_v25  ;;  %1085 = vadd.xlane.f32.xlu1 %v2019_v27  ;;  %v2021_v40 = vpop.eup %2020 }
 0x2ed   : > { %2024 = vpow2.f32 %v1027_v29  ;;  %v2023_v41 = vpop.eup %2022  ;;  %v1248_v36 = vpack.c.bf16 %v2021_v40, %v2017_v25  ;;  %v1038_v29 = vld [vmem:[#allocation3 + $0x8] sm:$0xff] }
 0x2ee   : > { %1075 = vadd.xlane.f32.xlu0 %v2011_v10  ;;  %v972_v35 = vpop.permute.xlu1 %971 }
 0x2ef   : > { %v1001_v14 = vsub.f32 %v2745_v49, %v972_v35 }
 0x2f0   : > { %v2980_v42 = vpop.permute.xlu2 %1167 }
 0x2f1   : > { %v1029_v0 = vmul.f32 1.442695, %v1001_v14 }
 0x2f3   : > { %v2025_v43 = vpop.eup %2024 }
 0x2f4   : > { %1079 = vadd.xlane.f32.xlu1 %v2021_v40  ;;  %1272 = vmatmul.bf16.gmra.mxu1 %v1248_v36  ;;  %v1251_v12 = vpack.c.bf16 %v2025_v43, %v2023_v41  ;;  %v1135_v40 = vld [vmem:[#allocation4] sm:$0xff]  ;;  %v1054_v36 = vmul.f32 %v2908_v9, %v1038_v29  ;;  %v1043_v9 = vld [vmem:[#allocation3 + $0x30] sm:$0xff] }
 0x2f5   : > { %1089 = vadd.xlane.f32.xlu2 %v2023_v41 }
 0x2f6   : > { %v977_v45 = vpop.permute.xlu0 %976  ;;  %1287 = vmatmul.bf16.vlgmr.msra.gmra.mxu3 %v1251_v12 }
 0x2f7   : > { %v1002_v2 = vsub.f32 %v2749_v53, %v977_v45 }
 0x2f8   : > { %v2985_v6 = vpop.permute.xlu2 %1182 }
 0x2f9   : > { %v1031_v7 = vmul.f32 1.442695, %v1002_v2 }
 0x2fb   : > { %2026 = vpow2.f32 %v1031_v7  ;;  %v1039_v7 = vld [vmem:[#allocation3 + $0x10] sm:$0xff] }
 0x2fc   : > { %1091 = vadd.xlane.f32.xlu1 %v2025_v43  ;;  %2028 = vpow2.f32 %v1029_v0  ;;  %v1037_v0 = vld [vmem:[#allocation3] sm:$0xff] }
 0x2fe   : > { %v982_v4 = vpop.permute.xlu1 %981 }
 0x2ff   : > { %v1003_v8 = vsub.f32 %v2753_v57, %v982_v4  ;;  %v907_v57 = vmul.f32 1.442695, %v876_v18  ;;  %v1053_v4 = vmul.f32 %v2878_v22, %v1037_v0 }
 0x300   : > { %v2994_v3 = vpop.permute.xlu2 %1197 }
 0x301   : > { %v2027_v37 = vpop.eup %2026  ;;  %v1033_v26 = vmul.f32 1.442695, %v1003_v8  ;;  %v1055_v8 = vmul.f32 %v2910_v30, %v1039_v7  ;;  %v1041_v30 = vld [vmem:[#allocation3 + $0x20] sm:$0xff] }
 0x302   : > { %1095 = vadd.xlane.f32.xlu2 %v2027_v37  ;;  %v2029_v38 = vpop.eup %2028 }
 0x303   : > { %2030 = vpow2.f32 %v1033_v26  ;;  %v1252_v49 = vpack.c.bf16 %v2027_v37, %v2029_v38 }
 0x304   : > { %1277 = vmatmul.bf16.gmra.mxu1 %v1249_v31 }
 0x306   : > { %v987_v55 = vpop.permute.xlu0 %986  ;;  %1292 = vmatmul.bf16.gmra.mxu3 %v1252_v49  ;;  %v957_v20 = vpop.permute.xlu1 %956  ;;  %v1044_v49 = vld [vmem:[#allocation3 + $0x38] sm:$0xff] }
 0x307   : > { %v1004_v53 = vsub.f32 %v2757_v61, %v987_v55  ;;  %v998_v58 = vsub.f32 %v2721_v32, %v957_v20  ;;  %v905_v32 = vmul.f32 1.442695, %v875_v16  ;;  %v1060_v55 = vmul.f32 %v2937_v21, %v1044_v49 }
 0x308   : > { %v3000_v59 = vpop.permute.xlu2 %1212 }
 0x309   : > { %v2031_v11 = vpop.eup %2030  ;;  %v1035_v10 = vmul.f32 1.442695, %v1004_v53  ;;  %v1023_v33 = vmul.f32 1.442695, %v998_v58  ;;  %v1059_v58 = vmul.f32 %v2914_v48, %v1043_v9 }
 0x30a   : > { %1097 = vadd.xlane.f32.xlu1 %v2031_v11 }
 0x30b   : > { %2032 = vpow2.f32 %v1035_v10  ;;  %v1045_v10 = vld [vmem:[#allocation3 + $0x40] sm:$0xff] }
 0x30c   : > { %2034 = vpow2.f32 %v1023_v33  ;;  %v1136_v33 = vld [vmem:[#allocation4 + $0x58] sm:$0xff] }
 0x30d   : > { %2036 = vpow2.f32 %v907_v57  ;;  %v1040_v57 = vld [vmem:[#allocation3 + $0x18] sm:$0xff] }
 0x30e   : > { %2038 = vpow2.f32 %v905_v32  ;;  %v1163_v18 = vpop.permute.xlu0 %1162  ;;  %v1158_v54 = vpop.permute.xlu1 %1157  ;;  %v1056_v48 = vmul.f32 %v2902_v5, %v1040_v57 }
 0x30f   : > { %2040 = vpow2.f32 %v903_v62  ;;  %v1231_v43 = vmul.f32 %v1158_v54, %v1135_v40 }
 0x311   : > { %v2033_v15 = vpop.eup %2032 }
 0x312   : > { %v2035_v17 = vpop.eup %2034  ;;  %v1253_v19 = vpack.c.bf16 %v2033_v15, %v2031_v11 }
 0x313   : > { %1087 = vadd.xlane.f32.xlu0 %v2035_v17  ;;  %v1250_v39 = vpack.c.bf16 %v2035_v17, %v2019_v27  ;;  %v2974_v61 = vpop.eup %2036  ;;  %v1061_v17 = vmul.f32 %v2939_v23, %v1045_v10  ;;  %v1137_v23 = vld [vmem:[#allocation4 + $0x18] sm:$0xff] }
 0x314   : > { %v2977_v28 = vpop.eup %2038  ;;  %v1233_v5 = vmul.f32 %v2980_v42, %v1137_v23  ;;  %v1050_v42 = vld [vmem:[#allocation3 + $0x68] sm:$0xff] }
 0x315   : > { %1282 = vmatmul.bf16.gmra.mxu1 %v1250_v39  ;;  %v2991_v60 = vpop.eup %2040 }
 0x316   : > { %1297 = vmatmul.bf16.gmra.mxu3 %v1253_v19  ;;  %v2987_v16 = vpop.permute.xlu0 %1172  ;;  %v2989_v34 = vpop.permute.xlu1 %1177  ;;  %v1232_v19 = vmul.f32 %v1163_v18, %v1136_v33 }
 0x31a   : > { %1227 = vperm.xlu2 %1976, %v2974_v61  }
 0x31b   : > { %1093 = vadd.xlane.f32.xlu0 %v2029_v38 }
 0x31e   : > { %v2996_v13 = vpop.permute.xlu0 %1187  ;;  %v2998_v25 = vpop.permute.xlu1 %1192 }
 0x323   : > { %1099 = vadd.xlane.f32.xlu0 %v2033_v15  ;;  %1222 = vperm.xlu1 %1975, %v2977_v28   ;;  %v1057_v15 = vmul.f32 %v2924_v44, %v1041_v30  ;;  %v1047_v44 = vld [vmem:[#allocation3 + $0x50] sm:$0xff] }
 0x326   : > { %v3002_v41 = vpop.permute.xlu0 %1202  ;;  %v3004_v35 = vpop.permute.xlu1 %1207 }
 0x337   : > { %1217 = vperm.xlu0 %1974, %v2991_v60  }
 0x343   : > { %v1263_v63 = vpop.f32.mrf.mxu1 }
 0x344   : > { %v1303_v27 = vadd.f32 %v1263_v63, %v1230_v56  ;;  %v1042_v63 = vld [vmem:[#allocation3 + $0x28] sm:$0xff] }
 0x345   : > { %v1058_v18 = vmul.f32 %v2926_v52, %v1042_v63 }
 0x346   : > { %1319 = vst [vmem:[#allocation4 + $0x30] sm:$0xff] %v1303_v27  ;;  %v1063_v27 = vmul.f32 %v2946_v46, %v1047_v44  ;;  %v1142_v44 = vld [vmem:[#allocation4 + $0x40] sm:$0xff] }
 0x34a   : > { %v1072_v12 = vpop.xlane.xlu2 %1071 }
 0x34b   : > { %v1102_v14 = vadd.f32 %v1072_v12, %v1054_v36  ;;  %v1265_v45 = vpop.f32.mrf.mxu1 }
 0x34c   : > { %v1304_v2 = vadd.f32 %v1265_v45, %v1231_v43  ;;  %v1048_v45 = vld [vmem:[#allocation3 + $0x58] sm:$0xff] }
 0x34d   : > { %1119 = vst.msk [vmem:[#allocation3 + $0x8] sm:$0xff] %vm1117_vm1, %v1102_v14  ;;  %v1064_v0 = vmul.f32 %v2948_v47, %v1048_v45 }
 0x34e   : > { %1320 = vst [vmem:[#allocation4] sm:$0xff] %v1304_v2  ;;  %v1138_v2 = vld [vmem:[#allocation4 + $0x50] sm:$0xff] }
 0x34f   : > { %v1234_v46 = vmul.f32 %v2987_v16, %v1138_v2 }
 0x351   : > { %v1070_v37 = vpop.xlane.xlu0 %1069  ;;  %v1074_v26 = vpop.xlane.xlu1 %1073 }
 0x352   : > { %v1101_v31 = vadd.f32 %v1070_v37, %v1053_v4  ;;  %v1103_v38 = vadd.f32 %v1074_v26, %v1055_v8  ;;  %v1066_v37 = vmul.f32 %v2991_v60, %v1050_v42  ;;  %v1139_v26 = vld [vmem:[#allocation4 + $0x68] sm:$0xff]  ;;  %v1145_v60 = vld [vmem:[#allocation4 + $0x38] sm:$0xff] }
 0x353   : > { %v1235_v9 = vmul.f32 %v2989_v34, %v1139_v26  ;;  %v1241_v34 = vmul.f32 %v3004_v35, %v1145_v60 }
 0x354   : > { %1118 = vst.msk [vmem:[#allocation3] sm:$0xff] %vm1117_vm1, %v1101_v31  ;;  %v1144_v31 = vld [vmem:[#allocation4 + $0x10] sm:$0xff] }
 0x355   : > { %1120 = vst.msk [vmem:[#allocation3 + $0x10] sm:$0xff] %vm1117_vm1, %v1103_v38  ;;  %v1240_v47 = vmul.f32 %v3002_v41, %v1144_v31 }
 0x357   : > { %v1084_v20 = vpop.xlane.xlu2 %1083 }
 0x358   : > { %v1108_v53 = vadd.f32 %v1084_v20, %v1060_v55  ;;  %v1051_v20 = vld [vmem:[#allocation3 + $0x70] sm:$0xff] }
 0x359   : > { %v1082_v11 = vpop.xlane.xlu0 %1081 }
 0x35a   : > { %1125 = vst.msk [vmem:[#allocation3 + $0x38] sm:$0xff] %vm1117_vm1, %v1108_v53  ;;  %v1107_v22 = vadd.f32 %v1082_v11, %v1059_v58  ;;  %v1067_v11 = vmul.f32 %v2977_v28, %v1051_v20 }
 0x35c   : > { %1124 = vst.msk [vmem:[#allocation3 + $0x30] sm:$0xff] %vm1117_vm1, %v1107_v22  ;;  %v1140_v22 = vld [vmem:[#allocation4 + $0x8] sm:$0xff] }
 0x35d   : > { %v1236_v33 = vmul.f32 %v2985_v6, %v1140_v22 }
 0x35f   : > { %v1078_v39 = vpop.xlane.xlu2 %1077  ;;  %v1086_v21 = vpop.xlane.xlu1 %1085 }
 0x360   : > { %v1105_v32 = vadd.f32 %v1078_v39, %v1057_v15  ;;  %v1109_v50 = vadd.f32 %v1086_v21, %v1061_v17  ;;  %v1046_v39 = vld [vmem:[#allocation3 + $0x48] sm:$0xff]  ;;  %v1146_v21 = vld [vmem:[#allocation4 + $0x60] sm:$0xff] }
 0x361   : > { %v1076_v54 = vpop.xlane.xlu0 %1075  ;;  %v1268_v62 = vpop.f32.mrf.mxu1  ;;  %v1062_v28 = vmul.f32 %v2932_v51, %v1046_v39 }
 0x362   : > { %1122 = vst.msk [vmem:[#allocation3 + $0x20] sm:$0xff] %vm1117_vm1, %v1105_v32  ;;  %v1104_v1 = vadd.f32 %v1076_v54, %v1056_v48  ;;  %v1305_v56 = vadd.f32 %v1268_v62, %v1232_v19  ;;  %v1141_v19 = vld [vmem:[#allocation4 + $0x48] sm:$0xff]  ;;  %v1242_v48 = vmul.f32 %v3000_v59, %v1146_v21 }
 0x363   : > { %1126 = vst.msk [vmem:[#allocation3 + $0x40] sm:$0xff] %vm1117_vm1, %v1109_v50  ;;  %v1237_v6 = vmul.f32 %v2996_v13, %v1141_v19 }
 0x364   : > { %1121 = vst.msk [vmem:[#allocation3 + $0x18] sm:$0xff] %vm1117_vm1, %v1104_v1 }
 0x365   : > { %1321 = vst [vmem:[#allocation4 + $0x58] sm:$0xff] %v1305_v56  ;;  %v1049_v56 = vld [vmem:[#allocation3 + $0x60] sm:$0xff] }
 0x366   : > { %v1065_v63 = vmul.f32 %v2943_v24, %v1049_v56 }
 0x367   : > { %v1080_v29 = vpop.xlane.xlu1 %1079 }
 0x368   : > { %v1090_v40 = vpop.xlane.xlu2 %1089  ;;  %v1106_v36 = vadd.f32 %v1080_v29, %v1058_v18  ;;  %v1238_v18 = vmul.f32 %v2998_v25, %v1142_v44 }
 0x369   : > { %v1111_v43 = vadd.f32 %v1090_v40, %v1063_v27  ;;  %v1270_v12 = vpop.f32.mrf.mxu1  ;;  %v1052_v27 = vld [vmem:[#allocation3 + $0x78] sm:$0xff] }
 0x36a   : > { %1123 = vst.msk [vmem:[#allocation3 + $0x28] sm:$0xff] %vm1117_vm1, %v1106_v36  ;;  %v1306_v14 = vadd.f32 %v1270_v12, %v1233_v5  ;;  %v1068_v5 = vmul.f32 %v2974_v61, %v1052_v27  ;;  %v1148_v40 = vld [vmem:[#allocation4 + $0x78] sm:$0xff] }
 0x36b   : > { %1128 = vst.msk [vmem:[#allocation3 + $0x50] sm:$0xff] %vm1117_vm1, %v1111_v43  ;;  %v1143_v43 = vld [vmem:[#allocation4 + $0x20] sm:$0xff] }
 0x36c   : > { %1322 = vst [vmem:[#allocation4 + $0x18] sm:$0xff] %v1306_v14  ;;  %v1239_v45 = vmul.f32 %v2994_v3, %v1143_v43 }
 0x36f   : > { %v1092_v52 = vpop.xlane.xlu1 %1091 }
 0x370   : > { %v1112_v7 = vadd.f32 %v1092_v52, %v1064_v0 }
 0x371   : > { %v1273_v4 = vpop.f32.mrf.mxu1 }
 0x372   : > { %1129 = vst.msk [vmem:[#allocation3 + $0x58] sm:$0xff] %vm1117_vm1, %v1112_v7  ;;  %v1307_v8 = vadd.f32 %v1273_v4, %v1234_v46  ;;  %v1149_v46 = vld [vmem:[#allocation4 + $0x28] sm:$0xff] }
 0x374   : > { %1323 = vst [vmem:[#allocation4 + $0x50] sm:$0xff] %v1307_v8  ;;  %v1147_v8 = vld [vmem:[#allocation4 + $0x70] sm:$0xff] }
 0x375   : > { %v1096_v38 = vpop.xlane.xlu2 %1095 }
 0x376   : > { %v1114_v49 = vadd.f32 %v1096_v38, %v1066_v37 }
 0x378   : > { %1131 = vst.msk [vmem:[#allocation3 + $0x68] sm:$0xff] %vm1117_vm1, %v1114_v49 }
 0x379   : > { %v1275_v16 = vpop.f32.mrf.mxu1  ;;  %v1288_v55 = vpop.f32.mrf.mxu3 }
 0x37a   : > { %v1308_v53 = vadd.f32 %v1275_v16, %v1235_v9  ;;  %v1313_v58 = vadd.f32 %v1288_v55, %v1240_v47 }
 0x37c   : > { %1324 = vst [vmem:[#allocation4 + $0x68] sm:$0xff] %v1308_v53 }
 0x37d   : > { %1329 = vst [vmem:[#allocation4 + $0x10] sm:$0xff] %v1313_v58  ;;  %v1098_v30 = vpop.xlane.xlu1 %1097  ;;  %v1228_v7 = vpop.permute.xlu2 %1227 }
 0x37e   : > { %v1115_v10 = vadd.f32 %v1098_v30, %v1067_v11  ;;  %v1245_v4 = vmul.f32 %v1228_v7, %v1149_v46 }
 0x380   : > { %1132 = vst.msk [vmem:[#allocation3 + $0x70] sm:$0xff] %vm1117_vm1, %v1115_v10 }
 0x381   : > { %v1278_v41 = vpop.f32.mrf.mxu1  ;;  %v1290_v57 = vpop.f32.mrf.mxu3 }
 0x382   : > { %v1309_v15 = vadd.f32 %v1278_v41, %v1236_v33  ;;  %v1314_v17 = vadd.f32 %v1290_v57, %v1241_v34 }
 0x384   : > { %1325 = vst [vmem:[#allocation4 + $0x8] sm:$0xff] %v1309_v15 }
 0x385   : > { %1330 = vst [vmem:[#allocation4 + $0x38] sm:$0xff] %v1314_v17 }
 0x386   : > { %v1088_v32 = vpop.xlane.xlu0 %1087 }
 0x387   : > { %v1110_v50 = vadd.f32 %v1088_v32, %v1062_v28 }
 0x389   : > { %1127 = vst.msk [vmem:[#allocation3 + $0x48] sm:$0xff] %vm1117_vm1, %v1110_v50  ;;  %v1280_v35 = vpop.f32.mrf.mxu1  ;;  %v1293_v54 = vpop.f32.mrf.mxu3 }
 0x38a   : > { %v1310_v62 = vadd.f32 %v1280_v35, %v1237_v6  ;;  %v1315_v1 = vadd.f32 %v1293_v54, %v1242_v48 }
 0x38c   : > { %1326 = vst [vmem:[#allocation4 + $0x48] sm:$0xff] %v1310_v62 }
 0x38d   : > { %1331 = vst [vmem:[#allocation4 + $0x60] sm:$0xff] %v1315_v1 }
 0x38e   : > { %v1094_v23 = vpop.xlane.xlu0 %1093 }
 0x38f   : > { %v1113_v51 = vadd.f32 %v1094_v23, %v1065_v63 }
 0x391   : > { %1130 = vst.msk [vmem:[#allocation3 + $0x60] sm:$0xff] %vm1117_vm1, %v1113_v51  ;;  %v1295_v59 = vpop.f32.mrf.mxu3 }
 0x392   : > { %v1283_v13 = vpop.f32.mrf.mxu1 }
 0x393   : > { %v1311_v29 = vadd.f32 %v1283_v13, %v1238_v18 }
 0x395   : > { %1327 = vst [vmem:[#allocation4 + $0x40] sm:$0xff] %v1311_v29  ;;  %v1223_v36 = vpop.permute.xlu1 %1222 }
 0x396   : > { %v1100_v12 = vpop.xlane.xlu0 %1099  ;;  %v1244_v24 = vmul.f32 %v1223_v36, %v1148_v40 }
 0x397   : > { %v1116_v14 = vadd.f32 %v1100_v12, %v1068_v5 }
 0x399   : > { %1133 = vst.msk [vmem:[#allocation3 + $0x78] sm:$0xff] %vm1117_vm1, %v1116_v14  ;;  %v1298_v25 = vpop.f32.mrf.mxu3 }
 0x39a   : > { %v1285_v2 = vpop.f32.mrf.mxu1  ;;  %v1317_v0 = vadd.f32 %v1298_v25, %v1244_v24 }
 0x39b   : > { %v1312_v52 = vadd.f32 %v1285_v2, %v1239_v45 }
 0x39c   : > { %1333 = vst [vmem:[#allocation4 + $0x78] sm:$0xff] %v1317_v0 }
 0x39d   : > { %1328 = vst [vmem:[#allocation4 + $0x20] sm:$0xff] %v1312_v52 }
 0x3a1   : > { %v1300_v61 = vpop.f32.mrf.mxu3 }
 0x3a2   : > { %v1318_v42 = vadd.f32 %v1300_v61, %v1245_v4 }
 0x3a4   : > { %1334 = vst [vmem:[#allocation4 + $0x28] sm:$0xff] %v1318_v42 }
 0x3a9   : > { %v1218_v37 = vpop.permute.xlu0 %1217 }
 0x3aa   : > { %v1243_v26 = vmul.f32 %v1218_v37, %v1147_v8  ;;  %1354 = sbr.rel (%p1756_p6) target bundleno = 1111 (0x457), region = 60 }
 0x3ac   : > { %v1316_v31 = vadd.f32 %v1295_v59, %v1243_v26 }
 0x3ae   : > { %1332 = vst [vmem:[#allocation4 + $0x70] sm:$0xff] %v1316_v31 }
 0x3af   : > { %v1359_v3 = vld [vmem:[#allocation3 + $0x20] sm:$0xff]  ;;  %v1357_v38 = vld [vmem:[#allocation3 + $0x10] sm:$0xff]  ;;  %v2316_v9 = vmov 0   ;;  %v1360_v47 = vld [vmem:[#allocation3 + $0x28] sm:$0xff] }
 0x3b0   : > { %v1355_v49 = vld [vmem:[#allocation3] sm:$0xff]  ;;  %2044 = vset.pattern.permute.xlu2 %v2316_v9  ;;  %2043 = vset.pattern.permute.xlu1 %v2316_v9  ;;  %2045 = vrcp.f32 %v1359_v3  ;;  %v1358_v16 = vld [vmem:[#allocation3 + $0x18] sm:$0xff]  ;;  %v1356_v55 = vld [vmem:[#allocation3 + $0x8] sm:$0xff] }
 0x3b1   : > { %2042 = vset.pattern.permute.xlu0 %v2316_v9  ;;  %2047 = vrcp.f32 %v1357_v38  ;;  %v1363_v11 = vld [vmem:[#allocation3 + $0x40] sm:$0xff]  ;;  %v1362_v60 = vld [vmem:[#allocation3 + $0x38] sm:$0xff]  ;;  %v1361_v10 = vld [vmem:[#allocation3 + $0x30] sm:$0xff] }
 0x3b2   : > { %2049 = vrcp.f32 %v1355_v49  ;;  %v1366_v34 = vld [vmem:[#allocation3 + $0x58] sm:$0xff]  ;;  %v1365_v57 = vld [vmem:[#allocation3 + $0x50] sm:$0xff]  ;;  %v1364_v17 = vld [vmem:[#allocation3 + $0x48] sm:$0xff] }
 0x3b3   : > { %2051 = vrcp.f32 %v1360_v47  ;;  %v1369_v21 = vld [vmem:[#allocation3 + $0x70] sm:$0xff]  ;;  %v1368_v28 = vld [vmem:[#allocation3 + $0x68] sm:$0xff]  ;;  %v1367_v50 = vld [vmem:[#allocation3 + $0x60] sm:$0xff] }
 0x3b4   : > { %2053 = vrcp.f32 %v1358_v16  ;;  %v1370_v54 = vld [vmem:[#allocation3 + $0x78] sm:$0xff]  ;;  %v1423_v56 = vld [vmem:[#allocation4 + $0x50] sm:$0xff]  ;;  %v1424_v23 = vld [vmem:[#allocation4 + $0x68] sm:$0xff] }
 0x3b5   : > { %2055 = vrcp.f32 %v1356_v55  ;;  %v1427_v59 = vld [vmem:[#allocation4 + $0x40] sm:$0xff]  ;;  %v1430_v29 = vld [vmem:[#allocation4 + $0x38] sm:$0xff]  ;;  %v1419_v36 = vld [vmem:[#allocation4 + $0x30] sm:$0xff] }
 0x3b6   : > { %v2046_v20 = vpop.eup %2045  ;;  %2057 = vrcp.f32 %v1363_v11  ;;  %v1421_v5 = vld [vmem:[#allocation4 + $0x58] sm:$0xff]  ;;  %v1420_v52 = vld [vmem:[#allocation4] sm:$0xff]  ;;  %v1388_v37 = vld [vmem:[%s2569_s3 + $0x8] sm:$0xff] }
 0x3b7   : > { %v2048_v53 = vpop.eup %2047  ;;  %1457 = vperm.xlu2 %2044, %v2046_v20   ;;  %2059 = vrcp.f32 %v1362_v60  ;;  %v1433_v25 = vld [vmem:[#allocation4 + $0x78] sm:$0xff]  ;;  %v1387_v8 = vld [vmem:[%s2569_s3] sm:$0xff]  ;;  %v1389_v26 = vld [vmem:[%s2569_s3 + $0x10] sm:$0xff]  ;;  %1404 = vst [vmem:[%s2586_s17 + $0x10] sm:$0xff] %v1388_v37 }
 0x3b8   : > { %v2050_v58 = vpop.eup %2049  ;;  %1447 = vperm.xlu1 %2043, %v2048_v53   ;;  %2061 = vrcp.f32 %v1361_v10  ;;  %v1422_v2 = vld [vmem:[#allocation4 + $0x18] sm:$0xff]  ;;  %1403 = vst [vmem:[%s2586_s17] sm:$0xff] %v1387_v8  ;;  %v1426_v3 = vld [vmem:[#allocation4 + $0x48] sm:$0xff]  ;;  %v1391_v38 = vld [vmem:[%s2569_s3 + $0x20] sm:$0xff] }
 0x3b9   : > { %1437 = vperm.xlu0 %2042, %v2050_v58   ;;  %v2052_v22 = vpop.eup %2051  ;;  %2063 = vrcp.f32 %v1366_v34  ;;  %v1390_v31 = vld [vmem:[%s2569_s3 + $0x18] sm:$0xff]  ;;  %v1425_v49 = vld [vmem:[#allocation4 + $0x8] sm:$0xff]  ;;  %1405 = vst [vmem:[%s2586_s17 + $0x20] sm:$0xff] %v1389_v26  ;;  %v1393_v53 = vld [vmem:[%s2569_s3 + $0x30] sm:$0xff] }
 0x3ba   : > { %v2054_v30 = vpop.eup %2053  ;;  %2065 = vrcp.f32 %v1365_v57  ;;  %v1392_v9 = vld [vmem:[%s2569_s3 + $0x28] sm:$0xff]  ;;  %1406 = vst [vmem:[%s2586_s17 + $0x30] sm:$0xff] %v1390_v31  ;;  %v1394_v58 = vld [vmem:[%s2569_s3 + $0x38] sm:$0xff]  ;;  %v1395_v11 = vld [vmem:[%s2569_s3 + $0x40] sm:$0xff] }
 0x3bb   : > { %v2056_v33 = vpop.eup %2055  ;;  %2067 = vrcp.f32 %v1364_v17  ;;  %1407 = vst [vmem:[%s2586_s17 + $0x40] sm:$0xff] %v1391_v38  ;;  %v1429_v60 = vld [vmem:[#allocation4 + $0x10] sm:$0xff]  ;;  %v1428_v10 = vld [vmem:[#allocation4 + $0x20] sm:$0xff] }
 0x3bc   : > { %v2058_v41 = vpop.eup %2057  ;;  %2069 = vrcp.f32 %v1369_v21  ;;  %1408 = vst [vmem:[%s2586_s17 + $0x50] sm:$0xff] %v1392_v9  ;;  %v1399_v17 = vld [vmem:[%s2569_s3 + $0x60] sm:$0xff]  ;;  %v1401_v21 = vld [vmem:[%s2569_s3 + $0x70] sm:$0xff] }
 0x3bd   : > { %v2060_v15 = vpop.eup %2059  ;;  %2071 = vrcp.f32 %v1368_v28  ;;  %1409 = vst [vmem:[%s2586_s17 + $0x60] sm:$0xff] %v1393_v53  ;;  %v1432_v28 = vld [vmem:[#allocation4 + $0x70] sm:$0xff] }
 0x3be   : > { %v2062_v39 = vpop.eup %2061  ;;  %2073 = vrcp.f32 %v1367_v50  ;;  %1410 = vst [vmem:[%s2586_s17 + $0x70] sm:$0xff] %v1394_v58 }
 0x3bf   : > { %1462 = vperm.xlu2 %2044, %v2052_v22   ;;  %v2064_v19 = vpop.eup %2063  ;;  %2075 = vrcp.f32 %v1370_v54  ;;  %v1396_v22 = vld [vmem:[%s2569_s3 + $0x48] sm:$0xff]  ;;  %1411 = vst [vmem:[%s2586_s17 + $0x80] sm:$0xff] %v1395_v11 }
 0x3c0   : > { %1452 = vperm.xlu1 %2043, %v2054_v30   ;;  %v2066_v32 = vpop.eup %2065  ;;  %v1397_v30 = vld [vmem:[%s2569_s3 + $0x50] sm:$0xff]  ;;  %1412 = vst [vmem:[%s2586_s17 + $0x90] sm:$0xff] %v1396_v22  ;;  %v1434_v54 = vld [vmem:[#allocation4 + $0x28] sm:$0xff] }
 0x3c1   : > { %1442 = vperm.xlu0 %2042, %v2056_v33   ;;  %v2068_v48 = vpop.eup %2067  ;;  %v1398_v33 = vld [vmem:[%s2569_s3 + $0x58] sm:$0xff]  ;;  %1413 = vst [vmem:[%s2586_s17 + $0xa0] sm:$0xff] %v1397_v30 }
 0x3c2   : > { %v2070_v6 = vpop.eup %2069  ;;  %1414 = vst [vmem:[%s2586_s17 + $0xb0] sm:$0xff] %v1398_v33 }
 0x3c3   : > { %v2072_v35 = vpop.eup %2071  ;;  %1415 = vst [vmem:[%s2586_s17 + $0xc0] sm:$0xff] %v1399_v17 }
 0x3c4   : > { %v2074_v62 = vpop.eup %2073  ;;  %1417 = vst [vmem:[%s2586_s17 + $0xe0] sm:$0xff] %v1401_v21 }
 0x3c5   : > { %v2076_v1 = vpop.eup %2075 }
 0x3c7   : > { %1477 = vperm.xlu2 %2044, %v2058_v41  }
 0x3c8   : > { %1472 = vperm.xlu1 %2043, %v2060_v15  }
 0x3c9   : > { %1467 = vperm.xlu0 %2042, %v2062_v39   ;;  %v1400_v39 = vld [vmem:[%s2569_s3 + $0x68] sm:$0xff] }
 0x3ca   : > { %1416 = vst [vmem:[%s2586_s17 + $0xd0] sm:$0xff] %v1400_v39 }
 0x3cf   : > { %1492 = vperm.xlu2 %2044, %v2064_v19   ;;  %v1402_v19 = vld [vmem:[%s2569_s3 + $0x78] sm:$0xff] }
 0x3d0   : > { %1487 = vperm.xlu1 %2043, %v2066_v32   ;;  %v1431_v32 = vld [vmem:[#allocation4 + $0x60] sm:$0xff]  ;;  %1418 = vst [vmem:[%s2586_s17 + $0xf0] sm:$0xff] %v1402_v19 }
 0x3d1   : > { %1482 = vperm.xlu0 %2042, %v2068_v48  }
 0x3d7   : > { %1507 = vperm.xlu2 %2044, %v2070_v6  }
 0x3d8   : > { %1502 = vperm.xlu1 %2043, %v2072_v35  }
 0x3d9   : > { %1497 = vperm.xlu0 %2042, %v2074_v62  }
 0x3e1   : > { %1512 = vperm.xlu0 %2042, %v2076_v1  }
 0x411   : > { %v1458_v63 = vpop.permute.xlu2 %1457 }
 0x412   : > { %v1519_v44 = vmul.f32 %v1458_v63, %v1423_v56 }
 0x414   : > { %1535 = vst [vmem:[%s2586_s17 + $0x48] sm:$0xff] %v1519_v44 }
 0x419   : > { %v1463_v51 = vpop.permute.xlu2 %1462 }
 0x41a   : > { %v1520_v18 = vmul.f32 %v1463_v51, %v1424_v23 }
 0x41c   : > { %1536 = vst [vmem:[%s2586_s17 + $0x58] sm:$0xff] %v1520_v18 }
 0x421   : > { %v1478_v13 = vpop.permute.xlu2 %1477 }
 0x422   : > { %v1523_v27 = vmul.f32 %v1478_v13, %v1427_v59 }
 0x424   : > { %1539 = vst [vmem:[%s2586_s17 + $0x88] sm:$0xff] %v1523_v27 }
 0x429   : > { %v1493_v40 = vpop.permute.xlu2 %1492 }
 0x42a   : > { %v1526_v43 = vmul.f32 %v1493_v40, %v1430_v29  ;;  %v1448_v12 = vpop.permute.xlu1 %1447 }
 0x42b   : > { %v1517_v14 = vmul.f32 %v1448_v12, %v1421_v5  ;;  %v1438_v24 = vpop.permute.xlu0 %1437 }
 0x42c   : > { %1542 = vst [vmem:[%s2586_s17 + $0xb8] sm:$0xff] %v1526_v43  ;;  %v1515_v45 = vmul.f32 %v1438_v24, %v1419_v36 }
 0x42d   : > { %1533 = vst [vmem:[%s2586_s17 + $0x28] sm:$0xff] %v1517_v14 }
 0x42e   : > { %1531 = vst [vmem:[%s2586_s17 + $0x8] sm:$0xff] %v1515_v45 }
 0x431   : > { %v1508_v0 = vpop.permute.xlu2 %1507 }
 0x432   : > { %v1529_v46 = vmul.f32 %v1508_v0, %v1433_v25  ;;  %v1453_v7 = vpop.permute.xlu1 %1452 }
 0x433   : > { %v1518_v4 = vmul.f32 %v1453_v7, %v1422_v2  ;;  %v1443_v61 = vpop.permute.xlu0 %1442 }
 0x434   : > { %1545 = vst [vmem:[%s2586_s17 + $0xe8] sm:$0xff] %v1529_v46  ;;  %v1516_v42 = vmul.f32 %v1443_v61, %v1420_v52 }
 0x435   : > { %1534 = vst [vmem:[%s2586_s17 + $0x38] sm:$0xff] %v1518_v4 }
 0x436   : > { %1532 = vst [vmem:[%s2586_s17 + $0x18] sm:$0xff] %v1516_v42 }
 0x43a   : > { %v1473_v47 = vpop.permute.xlu1 %1472 }
 0x43b   : > { %v1522_v16 = vmul.f32 %v1473_v47, %v1426_v3  ;;  %v1468_v55 = vpop.permute.xlu0 %1467 }
 0x43c   : > { %v1521_v20 = vmul.f32 %v1468_v55, %v1425_v49 }
 0x43d   : > { %1538 = vst [vmem:[%s2586_s17 + $0x78] sm:$0xff] %v1522_v16 }
 0x43e   : > { %1537 = vst [vmem:[%s2586_s17 + $0x68] sm:$0xff] %v1521_v20 }
 0x442   : > { %v1488_v34 = vpop.permute.xlu1 %1487 }
 0x443   : > { %v1525_v41 = vmul.f32 %v1488_v34, %v1429_v60  ;;  %v1483_v57 = vpop.permute.xlu0 %1482 }
 0x444   : > { %v1524_v15 = vmul.f32 %v1483_v57, %v1428_v10 }
 0x445   : > { %1541 = vst [vmem:[%s2586_s17 + $0xa8] sm:$0xff] %v1525_v41 }
 0x446   : > { %1540 = vst [vmem:[%s2586_s17 + $0x98] sm:$0xff] %v1524_v15 }
 0x44a   : > { %v1503_v50 = vpop.permute.xlu1 %1502 }
 0x44b   : > { %v1528_v48 = vmul.f32 %v1503_v50, %v1432_v28  ;;  %v1498_v6 = vpop.permute.xlu0 %1497 }
 0x44c   : > { %v1527_v35 = vmul.f32 %v1498_v6, %v1431_v32 }
 0x44d   : > { %1544 = vst [vmem:[%s2586_s17 + $0xd8] sm:$0xff] %v1528_v48 }
 0x44e   : > { %1543 = vst [vmem:[%s2586_s17 + $0xc8] sm:$0xff] %v1527_v35 }
 0x453   : > { %v1513_v62 = vpop.permute.xlu0 %1512 }
 0x454   : > { %v1530_v1 = vmul.f32 %v1513_v62, %v1434_v54 }
 0x456   : > { %1546 = vst [vmem:[%s2586_s17 + $0xf8] sm:$0xff] %v1530_v1 }
 0x457 PF: > { %s3232_s10 = sld [smem:[#allocation21_spill]]  ;;  %s1563_s26 = sshll.u32 %s2586_s17, 4  ;;  %s1564_s26 = int_to_ptr.vmem [resolvable:$true] %s1563_s26 }
 0x458   : > { %s3233_s3 = sld [smem:[#allocation22_spill]]  ;;  %s1548_s14 = scalar_lea.sflag [#allocation9], %s2565_s11 }
 0x459   : > { %s3235_s12 = sld [smem:[#allocation34_spill]] }
 0x45d   : > { %s1772_s24 = sshll.u32 %s3232_s10, 5 }
 0x45e   : > { %s1760_s9 = sshll.u32 %s3233_s3, 6 }
 0x45f   : > { %s1560_s15 = sadd.s32 %s1772_s24, %s1760_s9  ;;  %s2187_s17 = scalar_lea.hbm %s3235_s12, 1024 }
 0x460   : > { %s1761_s13 = sshll.u32 %s1560_s15, 3 }
 0x461   : > { %s1562_s22 = scalar_lea.hbm %s3235_s12, %s1761_s13 }
 0x462   : > { %s1565_s8 = sshll.u32 %s1562_s22, 4  ;;  %s1566_s8 = int_to_ptr.hbm [resolvable:$true] %s1565_s8 }
 0x463   : > { %s2181_s18 = sshra.s32 %s1566_s8, 4  ;;  %s2182_s18 = int_to_ptr.hbm [resolvable:$true] %s2181_s18 }
 0x464   : > { %s2183_s4 = scalar_lea.hbm %s2182_s18, 256  ;;  %p2188_p5 = scmp.lt.s32.totalorder %s2182_s18, %s3235_s12 }
 0x465   : > { %p2184_p8 = scmp.ne.s32.totalorder %s2182_s18, %s2183_s4  ;;  %p2189_p9 = scmp.lt.s32.totalorder %s2187_s17, %s2183_s4 }
 0x467   : > { %p2185_p11 = pnand %p2184_p8, %p2512_p0  ;;  %p2190_p1 = por %p2189_p9, %p2188_p5 }
 0x469   : > { %p2186_p4 = pneg %p2185_p11 }
 0x46b   : > { %p2191_p10 = pnand %p2190_p1, %p2186_p4 }
 0x46d   : > { %2194 = shalt.err (!%p2191_p10)
}
 0x46e   : > { %s2317_s11 = smov 256   ;;  %s2318_s3 = smov 16  }
 0x46f   : > { %1842 = dma.vmem_to_hbm [thread:$0]  (%p2512_p0), %s1564_s26, 4096, %s1566_s8, %s1548_s14, %s2317_s11, %s2317_s11, %s2318_s3  }
 0x470 PF: > { %s3236_s24 = sld [smem:[#allocation18_spill]]  ;;  %p1859_p12 = scmp.ge.s32.totalorder %s2309_s30, 2 }
 0x472   : > { %p1855_p3 = pnand %p1859_p12, %p2523_p2 }
 0x474   : > { %p1856_p13 = pneg %p1855_p3 }
 0x476   : > { %s1580_s15 = sand.u32 1, %s3236_s24  }
 0x477   : > { %s1581_s13 = scalar_lea.sflag [#allocation9], %s1580_s15 }
 0x478   : > { %2256 = dma.done.wait (%p1856_p13), %s1581_s13, 4096  }
 0x479   : > { %2258 = vsyncadd (%p1856_p13), %s1581_s13, 4294963200  ;;  %s24_s30 = sadd.s32 1, %s2309_s30   ;;  %s3239_s18 = sld [smem:[#allocation17_spill]] }
 0x47a   : > { %p3119_p7 = scmp.ge.s32.totalorder %s24_s30, 10   ;;  %s3240_s25 = smov %s2540_s19 }
 0x47b   : > { %s3241_s26 = sld [smem:[#allocation19_spill]]  ;;  %s3242_s6 = smov %s2535_s21 }
 0x47c   : > { %s3243_s8 = sld [smem:[#allocation23_spill]]  ;;  %s3247_s19 = smov %s2269_s20 }
 0x47d   : > { %s3244_s14 = sld [smem:[#allocation27_spill]]  ;;  %s3248_s20 = smov %s3240_s25 }
 0x47e   : > { %s3245_s4 = sld [smem:[#allocation29_spill]]  ;;  %s3250_s22 = smov %s2281_s23 }
 0x47f   : > { %s3251_s23 = smov %s3242_s6  ;;  %s3252_s24 = smov %s2297_s27 }
 0x480   : > { %s3255_s27 = smov %s3259_s7  ;;  %23 = sbr.rel (!%p3119_p7) target bundleno = 17 (0x11), region = 117 }
 0x481   : > { %s3249_s21 = smov %s3241_s26  ;;  %s3254_s26 = smov %s2305_s29 }
 0x482   : > { %s3253_s25 = smov %s3243_s8 }
 0x483   : > { %s3256_s28 = smov %s3244_s14 }
 0x484   : > { %s3257_s29 = smov %s3245_s4 }
 0x485   :  { %1587 = vsyncpa [#allocation8], 1 }
 0x486   :  { %1589 = vsyncpa [#allocation8 + $0x1], 1 }
 0x487   :  { %1590 = vsyncpa [#allocation11], 1 }
 0x488   :  { %1592 = vsyncpa [#allocation11 + $0x1], 1 }
 0x489   :  { %1593 = vsyncpa [#allocation9], 1 }
 0x48a   :  { %1595 = vsyncpa [#allocation9 + $0x1], 1 }

</bundles_post_ra>
